<compile_context>
chip_gen: v6e
topology: v6e:2x2x1
jax: 0.10.0
libtpu: 0.0.40
codegen_flags: <defaults>
</compile_context>

<pallas_src>
import functools

import jax
import jax.numpy as jnp
from jax.experimental import pallas as pl
from jax.experimental.pallas import tpu as pltpu


def _round_up(n, m):
    return ((n + m - 1) // m) * m


def _pad2(a, rows, cols):
    return jnp.pad(a, ((0, rows - a.shape[0]), (0, cols - a.shape[1])))


def _nbytes(a):
    return int(a.size) * int(a.dtype.itemsize)


def _vmem_budget_bytes():
    """Usable VMEM: physical capacity minus compiler-scratch headroom."""
    try:
        cap = int(pltpu.get_tpu_info().vmem_capacity_bytes)
    except Exception:
        cap = 64 << 20          # assume the smallest generation (v7x) if unknown
    return max(cap - (16 << 20), 32 << 20)   # v7x -> 48 MiB, v5e/v6e -> 112 MiB


def _clamp_limit(need, budget):
    return int(min(max(int(need), 32 << 20), int(budget)))


# ---------------------------------------------------------------------------
# Fused kernel: both passes over the batch inside ONE pallas_call.
#   grid = (phase, batch_tile); h1 lives in a VMEM scratch between phases.
# ---------------------------------------------------------------------------
def _fused_kernel(x_ref, w1_ref, b1_ref, gamma_ref, beta_ref, w2_ref, b2_ref,
                  wp_ref, z_ref, p_ref,
                  h1_scr, ssum_scr, ssq_scr, scale_scr, shift_scr,
                  *, tile_b, b_real, nb, eps):
    ph = pl.program_id(0)     # 0: linear1 + BN stats, 1: BN apply + the rest
    i = pl.program_id(1)      # batch tile

    @pl.when(ph == 0)
    def _first_pass():
        @pl.when(i == 0)
        def _init():
            ssum_scr[...] = jnp.zeros_like(ssum_scr)
            ssq_scr[...] = jnp.zeros_like(ssq_scr)

        # Linear 1: cast x to bf16 in-kernel (hidden under the MXU matmul).
        h = jnp.dot(x_ref[...].astype(jnp.bfloat16), w1_ref[...],
                    preferred_element_type=jnp.float32) + b1_ref[...]
        hb = h.astype(jnp.bfloat16)      # phase 1 sees exactly these values
        h1_scr[i] = hb
        hf = hb.astype(jnp.float32)

        def _accum(ones_row):
            # Per-feature column sums via an MXU ones-row matmul.
            ssum_scr[...] += jnp.dot(ones_row, hf,
                                     preferred_element_type=jnp.float32)
            ssq_scr[...] += jnp.dot(ones_row, hf * hf,
                                    preferred_element_type=jnp.float32)

        if b_real % tile_b == 0:
            _accum(jnp.ones((1, tile_b), jnp.float32))
        else:
            # Only the final tile is partial; full tiles skip the iota mask.
            @pl.when(i < nb - 1)
            def _full_tile():
                _accum(jnp.ones((1, tile_b), jnp.float32))

            @pl.when(i == nb - 1)
            def _partial_tile():
                row = (jax.lax.broadcasted_iota(jnp.int32, (1, tile_b), 1)
                       + i * tile_b)
                _accum((row < b_real).astype(jnp.float32))

        # Finalize BN scale/shift once, at the last phase-0 step.
        @pl.when(i == nb - 1)
        def _finalize():
            inv_b = 1.0 / float(b_real)
            mean = ssum_scr[...] * inv_b
            var = jnp.maximum(ssq_scr[...] * inv_b - mean * mean, 0.0)
            scale = gamma_ref[...] * jax.lax.rsqrt(var + eps)
            scale_scr[...] = scale
            shift_scr[...] = beta_ref[...] - mean * scale

    @pl.when(ph == 1)
    def _second_pass():
        # Fused BN (one FMA) + ReLU on the VMEM-resident h1.
        h = jnp.maximum(
            h1_scr[i].astype(jnp.float32) * scale_scr[...] + shift_scr[...],
            0.0)
        z = jnp.dot(h.astype(jnp.bfloat16), w2_ref[...],
                    preferred_element_type=jnp.float32) + b2_ref[...]
        # torch F.normalize(p=2, dim=1): z * rsqrt(max(sum(z^2), 1e-24)).
        z = z * jax.lax.rsqrt(
            jnp.maximum(jnp.sum(z * z, axis=1, keepdims=True), 1e-24))
        z_ref[...] = z.astype(z_ref.dtype)
        p_ref[...] = jnp.dot(z.astype(jnp.bfloat16), wp_ref[...],
                             preferred_element_type=jnp.float32).astype(
                                 p_ref.dtype)


# ---------------------------------------------------------------------------
# Fallback stage 1: Linear 1 + per-tile partial BN sums ("parallel" batch axis)
# ---------------------------------------------------------------------------
def _stage1_kernel(x_ref, w1_ref, b1_ref, h1_ref, psum_ref, psq_ref,
                   *, tile_b, b_real, nb):
    i = pl.program_id(0)

    h = jnp.dot(x_ref[...].astype(jnp.bfloat16), w1_ref[...],
                preferred_element_type=jnp.float32) + b1_ref[...]
    hb = h.astype(jnp.bfloat16)          # stage 2 sees exactly these values
    h1_ref[...] = hb
    hf = hb.astype(jnp.float32)

    def _put(ones_row):
        # Each tile writes its own partial sums: no cross-iteration state.
        psum_ref[0] = jnp.dot(ones_row, hf, preferred_element_type=jnp.float32)
        psq_ref[0] = jnp.dot(ones_row, hf * hf,
                             preferred_element_type=jnp.float32)

    if b_real % tile_b == 0:
        _put(jnp.ones((1, tile_b), jnp.float32))
    else:
        @pl.when(i < nb - 1)
        def _full_tile():
            _put(jnp.ones((1, tile_b), jnp.float32))

        @pl.when(i == nb - 1)
        def _partial_tile():
            row = (jax.lax.broadcasted_iota(jnp.int32, (1, tile_b), 1)
                   + i * tile_b)
            _put((row < b_real).astype(jnp.float32))


# ---------------------------------------------------------------------------
# Fallback stage 2: BN apply (pre-finalized scale/shift) + ReLU + Linear 2
#                   + L2-normalize + prototype logits
# ---------------------------------------------------------------------------
def _stage2_kernel(h1_ref, scale_ref, shift_ref, w2_ref, b2_ref, wp_ref,
                   z_ref, p_ref):
    h = jnp.maximum(h1_ref[...].astype(jnp.float32) * scale_ref[...]
                    + shift_ref[...], 0.0)
    z = jnp.dot(h.astype(jnp.bfloat16), w2_ref[...],
                preferred_element_type=jnp.float32) + b2_ref[...]
    z = z * jax.lax.rsqrt(
        jnp.maximum(jnp.sum(z * z, axis=1, keepdims=True), 1e-24))
    z_ref[...] = z.astype(z_ref.dtype)
    p_ref[...] = jnp.dot(z.astype(jnp.bfloat16), wp_ref[...],
                         preferred_element_type=jnp.float32).astype(p_ref.dtype)


# ---------------------------------------------------------------------------
# Parameter preparation (done ONCE, outside the per-step forward path)
# ---------------------------------------------------------------------------
def prepare_swav_head_params(params):
    """Pad feature dims to multiples of 128 (lane-dense) and cast weights to
    bf16 once.  Zero padding keeps the math exact."""
    in_dim, hid_dim = params["w1"].shape
    out_dim = params["w2"].shape[1]
    k_dim = params["wp"].shape[1]
    in_p, hid_p = _round_up(in_dim, 128), _round_up(hid_dim, 128)
    out_p, k_p = _round_up(out_dim, 128), _round_up(k_dim, 128)
    return dict(
        w1=_pad2(params["w1"], in_p, hid_p).astype(jnp.bfloat16),
        b1=_pad2(params["b1"], 1, hid_p).astype(jnp.float32),
        gamma=_pad2(params["gamma"], 1, hid_p).astype(jnp.float32),
        beta=_pad2(params["beta"], 1, hid_p).astype(jnp.float32),
        w2=_pad2(params["w2"], hid_p, out_p).astype(jnp.bfloat16),
        b2=_pad2(params["b2"], 1, out_p).astype(jnp.float32),
        wp=_pad2(params["wp"], out_p, k_p).astype(jnp.bfloat16),
        dims=(in_dim, hid_dim, out_dim, k_dim),
    )


# ---------------------------------------------------------------------------
# Forward wrapper
# ---------------------------------------------------------------------------
def swav_head(x, prep, *, tile_b=256, eps=1e-5, proto_dtype=jnp.float32,
              force_two_stage=False):
    """x: (B, in_dim) float32.  prep: output of prepare_swav_head_params."""
    B, in_dim_x = x.shape
    in_dim, hid_dim, out_dim, k_dim = prep["dims"]
    assert in_dim_x == in_dim
    w1, b1 = prep["w1"], prep["b1"]
    gamma, beta = prep["gamma"], prep["beta"]
    w2, b2, wp = prep["w2"], prep["b2"], prep["wp"]
    in_p, hid_p = w1.shape
    out_p = w2.shape[1]
    k_p = wp.shape[1]

    tile_b = _round_up(min(int(tile_b), max(B, 1)), 16)   # bf16 sublane packing
    bp = _round_up(B, tile_b)
    nb = bp // tile_b

    # x stays f32; only zero-pad if the shape actually needs it.
    x_p = x.astype(jnp.float32)
    if x_p.shape != (bp, in_p):
        x_p = _pad2(x_p, bp, in_p)

    pbytes = jnp.dtype(proto_dtype).itemsize
    budget = _vmem_budget_bytes()

    # VMEM footprint of the fused (h1-resident) variant: double-buffered
    # inputs/outputs + the full (bp, hid_p) bf16 h1 scratch + BN row scratches.
    fused_need = (
        2 * (tile_b * in_p * 4 + in_p * hid_p * 2 + hid_p * out_p * 2
             + out_p * k_p * 2 + 3 * hid_p * 4 + out_p * 4)
        + 2 * (tile_b * out_p * 4 + tile_b * k_p * pbytes)
        + bp * hid_p * 2 + 4 * hid_p * 4
        + tile_b * (hid_p + out_p + k_p) * 4
        + (4 << 20))

    if (not force_two_stage) and fused_need <= budget:
        # ---- Fused single-kernel path --------------------------------------
        kernel = functools.partial(_fused_kernel, tile_b=tile_b, b_real=B,
                                   nb=nb, eps=float(eps))
        flops = (2 * bp * in_p * hid_p + 4 * bp * hid_p
                 + 2 * bp * hid_p * out_p + 2 * bp * out_p * k_p)
        bytes_acc = (bp * in_p * 4 + _nbytes(w1) + _nbytes(b1) + _nbytes(gamma)
                     + _nbytes(beta) + _nbytes(w2) + _nbytes(b2) + _nbytes(wp)
                     + bp * out_p * 4 + bp * k_p * pbytes)
        zf, pf = pl.pallas_call(
            kernel,
            out_shape=(jax.ShapeDtypeStruct((bp, out_p), jnp.float32),
                       jax.ShapeDtypeStruct((bp, k_p), proto_dtype)),
            grid_spec=pltpu.PrefetchScalarGridSpec(
                num_scalar_prefetch=0,
                grid=(2, nb),                       # (phase, batch tile)
                in_specs=[
                    # x: streamed in phase 0, parked on block 0 in phase 1.
                    pl.BlockSpec((tile_b, in_p),
                                 lambda ph, i: (i * (1 - ph), 0)),
                    pl.BlockSpec((in_p, hid_p), lambda ph, i: (0, 0)),   # W1
                    pl.BlockSpec((1, hid_p), lambda ph, i: (0, 0)),      # b1
                    pl.BlockSpec((1, hid_p), lambda ph, i: (0, 0)),      # gamma
                    pl.BlockSpec((1, hid_p), lambda ph, i: (0, 0)),      # beta
                    pl.BlockSpec((hid_p, out_p), lambda ph, i: (0, 0)),  # W2
                    pl.BlockSpec((1, out_p), lambda ph, i: (0, 0)),      # b2
                    pl.BlockSpec((out_p, k_p), lambda ph, i: (0, 0)),    # Wp
                ],
                out_specs=(
                    # Parked on block 0 during phase 0 (never written there),
                    # streamed out during phase 1.
                    pl.BlockSpec((tile_b, out_p), lambda ph, i: (i * ph, 0)),
                    pl.BlockSpec((tile_b, k_p), lambda ph, i: (i * ph, 0)),
                ),
                scratch_shapes=[
                    pltpu.VMEM((nb, tile_b, hid_p), jnp.bfloat16),  # h1
                    pltpu.VMEM((1, hid_p), jnp.float32),            # sum
                    pltpu.VMEM((1, hid_p), jnp.float32),            # sum of sq
                    pltpu.VMEM((1, hid_p), jnp.float32),            # BN scale
                    pltpu.VMEM((1, hid_p), jnp.float32),            # BN shift
                ]),
            compiler_params=pltpu.CompilerParams(
                # BN stats + the h1 scratch carry state across grid steps.
                dimension_semantics=("arbitrary", "arbitrary"),
                vmem_limit_bytes=_clamp_limit(fused_need, budget)),
            cost_estimate=pl.CostEstimate(
                flops=int(flops), transcendentals=int(bp + hid_p),
                bytes_accessed=int(bytes_acc)),
        )(x_p, w1, b1, gamma, beta, w2, b2, wp)
        return zf[:B, :out_dim], pf[:B, :k_dim]

    # ---- Fallback: h1 round-trips through HBM (two pallas_calls) -----------
    s1_need = (2 * (tile_b * in_p * 4 + in_p * hid_p * 2 + hid_p * 4)
               + 2 * (tile_b * hid_p * 2 + 2 * hid_p * 4)
               + tile_b * hid_p * 4 + (4 << 20))
    stage1 = functools.partial(_stage1_kernel, tile_b=tile_b, b_real=B, nb=nb)
    h1, psum, psq = pl.pallas_call(
        stage1,
        out_shape=(jax.ShapeDtypeStruct((bp, hid_p), jnp.bfloat16),
                   jax.ShapeDtypeStruct((nb, 1, hid_p), jnp.float32),
                   jax.ShapeDtypeStruct((nb, 1, hid_p), jnp.float32)),
        grid_spec=pltpu.PrefetchScalarGridSpec(
            num_scalar_prefetch=0,
            grid=(nb,),
            in_specs=[
                pl.BlockSpec((tile_b, in_p), lambda i: (i, 0)),
                pl.BlockSpec((in_p, hid_p), lambda i: (0, 0)),   # resident W1
                pl.BlockSpec((1, hid_p), lambda i: (0, 0)),      # resident b1
            ],
            out_specs=(
                pl.BlockSpec((tile_b, hid_p), lambda i: (i, 0)),
                pl.BlockSpec((1, 1, hid_p), lambda i: (i, 0, 0)),  # partial sum
                pl.BlockSpec((1, 1, hid_p), lambda i: (i, 0, 0)),  # partial sq
            )),
        compiler_params=pltpu.CompilerParams(
            dimension_semantics=("parallel",),   # per-tile partials -> megacore
            vmem_limit_bytes=_clamp_limit(s1_need, budget)),
        cost_estimate=pl.CostEstimate(
            flops=int(2 * bp * in_p * hid_p + 4 * bp * hid_p),
            transcendentals=0,
            bytes_accessed=int(bp * in_p * 4 + _nbytes(w1) + _nbytes(b1)
                               + bp * hid_p * 2 + 2 * nb * hid_p * 4)),
    )(x_p, w1, b1)

    # Finalize full-batch BN scale/shift once (tiny (nb, hid) reduction).
    ssum = jnp.sum(psum[:, 0, :], axis=0, keepdims=True)
    ssq = jnp.sum(psq[:, 0, :], axis=0, keepdims=True)
    mean = ssum / B
    var = jnp.maximum(ssq / B - mean * mean, 0.0)     # biased var (torch train)
    scale = gamma * jax.lax.rsqrt(var + eps)
    shift = beta - mean * scale

    s2_need = (2 * (tile_b * hid_p * 2 + 2 * hid_p * 4 + hid_p * out_p * 2
                    + out_p * 4 + out_p * k_p * 2)
               + 2 * (tile_b * out_p * 4 + tile_b * k_p * pbytes)
               + tile_b * (hid_p + out_p + k_p) * 4 + (4 << 20))
    zf, pf = pl.pallas_call(
        _stage2_kernel,
        out_shape=(jax.ShapeDtypeStruct((bp, out_p), jnp.float32),
                   jax.ShapeDtypeStruct((bp, k_p), proto_dtype)),
        grid_spec=pltpu.PrefetchScalarGridSpec(
            num_scalar_prefetch=0,
            grid=(nb,),
            in_specs=[
                pl.BlockSpec((tile_b, hid_p), lambda i: (i, 0)),
                pl.BlockSpec((1, hid_p), lambda i: (0, 0)),      # BN scale
                pl.BlockSpec((1, hid_p), lambda i: (0, 0)),      # BN shift
                pl.BlockSpec((hid_p, out_p), lambda i: (0, 0)),  # resident W2
                pl.BlockSpec((1, out_p), lambda i: (0, 0)),      # resident b2
                pl.BlockSpec((out_p, k_p), lambda i: (0, 0)),    # resident Wp
            ],
            out_specs=(
                pl.BlockSpec((tile_b, out_p), lambda i: (i, 0)),
                pl.BlockSpec((tile_b, k_p), lambda i: (i, 0)),
            )),
        compiler_params=pltpu.CompilerParams(
            dimension_semantics=("parallel",),    # batch tiles independent
            vmem_limit_bytes=_clamp_limit(s2_need, budget)),
        cost_estimate=pl.CostEstimate(
            flops=int(2 * bp * hid_p * out_p + 2 * bp * out_p * k_p),
            transcendentals=int(bp),
            bytes_accessed=int(bp * hid_p * 2 + 2 * hid_p * 4 + _nbytes(w2)
                               + _nbytes(b2) + _nbytes(wp)
                               + bp * out_p * 4 + bp * k_p * pbytes)),
    )(h1, scale, shift, w2, b2, wp)
    return zf[:B, :out_dim], pf[:B, :k_dim]


# ---------------------------------------------------------------------------
# Parameters and references
# ---------------------------------------------------------------------------
def make_params(key, in_dim, hid_dim, out_dim, num_prototypes):
    """Deterministic synthetic parameters (shapes follow the torch module)."""
    ks = jax.random.split(key, 6)
    # torch nn.Linear stores weight as (out, in); we pre-transpose to (in, out).
    w1 = jax.random.normal(ks[0], (in_dim, hid_dim), jnp.float32) * 0.05
    b1 = jax.random.normal(ks[1], (1, hid_dim), jnp.float32) * 0.05
    gamma = 1.0 + 0.1 * jax.random.normal(ks[2], (1, hid_dim), jnp.float32)
    beta = 0.1 * jax.random.normal(ks[3], (1, hid_dim), jnp.float32)
    w2 = jax.random.normal(ks[4], (hid_dim, out_dim), jnp.float32) * 0.05
    b2 = jax.random.normal(ks[5], (1, out_dim), jnp.float32) * 0.05
    # MultiPrototypes: only the last head's output is returned by the module.
    kp = jax.random.fold_in(key, len(num_prototypes) - 1)
    wp = jax.random.normal(kp, (out_dim, num_prototypes[-1]), jnp.float32) * 0.05
    return dict(w1=w1, b1=b1, gamma=gamma, beta=beta, w2=w2, b2=b2, wp=wp)


def swav_head_ref_f32(x, prm):
    """Pure-f32 reference with exact torch BatchNorm1d/F.normalize semantics."""
    h = x @ prm["w1"] + prm["b1"]
    mean = jnp.mean(h, axis=0, keepdims=True)
    var = jnp.mean((h - mean) ** 2, axis=0, keepdims=True)
    h = (h - mean) / jnp.sqrt(var + 1e-5) * prm["gamma"] + prm["beta"]
    h = jnp.maximum(h, 0.0)
    z = h @ prm["w2"] + prm["b2"]
    z = z / jnp.maximum(jnp.linalg.norm(z, axis=1, keepdims=True), 1e-12)
    return z, z @ prm["wp"]


def swav_head_ref_mirror(x, prm):
    """Mirrors the kernel's bf16-operand / f32-accumulate numerics."""
    f32 = jnp.float32
    h = jnp.dot(x.astype(jnp.bfloat16), prm["w1"].astype(jnp.bfloat16),
                preferred_element_type=f32) + prm["b1"]
    h = h.astype(jnp.bfloat16).astype(f32)
    mean = jnp.mean(h, axis=0, keepdims=True)
    var = jnp.maximum(jnp.mean(h * h, axis=0, keepdims=True) - mean * mean, 0.0)
    scale = prm["gamma"] * jax.lax.rsqrt(var + 1e-5)
    shift = prm["beta"] - mean * scale
    h = jnp.maximum(h * scale + shift, 0.0)
    z = jnp.dot(h.astype(jnp.bfloat16), prm["w2"].astype(jnp.bfloat16),
                preferred_element_type=f32) + prm["b2"]
    z = z * jax.lax.rsqrt(jnp.maximum(jnp.sum(z * z, axis=1, keepdims=True),
                                      1e-24))
    p = jnp.dot(z.astype(jnp.bfloat16), prm["wp"].astype(jnp.bfloat16),
                preferred_element_type=f32)
    return z, p


if __name__ == "__main__":
    # Small but non-trivial shapes: exercises batch tiling (3 tiles of 128),
    # partial-tile masking (272 real rows of a 384-row padded batch) and lane
    # padding of every feature dimension.
    B, in_dim, hid_dim, out_dim = 272, 192, 160, 80
    num_prototypes = [30, 50]   # module returns only the last head's logits

    key = jax.random.PRNGKey(0)
    kx, kp = jax.random.split(key)
    x = jax.random.normal(kx, (B, in_dim), jnp.float32)
    params = make_params(kp, in_dim, hid_dim, out_dim, num_prototypes)
    prep = prepare_swav_head_params(params)     # pad + bf16 cast ONCE

    z_m, p_m = swav_head_ref_mirror(x, params)
    z_f, p_f = swav_head_ref_f32(x, params)

    def check(z, p, tag):
        assert z.shape == (B, out_dim) and p.shape == (B, num_prototypes[-1])
        # Tight check vs a reference mirroring the kernel's bf16 numerics.
        assert jnp.allclose(z, z_m, atol=1e-2, rtol=5e-2), (
            f"[{tag}] z mismatch vs mirror ref: "
            f"{float(jnp.max(jnp.abs(z - z_m)))}")
        assert jnp.allclose(p, p_m, atol=1e-2, rtol=5e-2), (
            f"[{tag}] p mismatch vs mirror ref: "
            f"{float(jnp.max(jnp.abs(p - p_m)))}")
        # Looser sanity check vs exact-f32 torch-semantics reference.
        assert jnp.allclose(z, z_f, atol=5e-2, rtol=5e-2), tag
        assert jnp.allclose(p, p_f, atol=5e-2, rtol=5e-2), tag

    # Fused single-kernel path (h1 stays resident in VMEM).
    z1, p1 = swav_head(x, prep, tile_b=128)
    jax.block_until_ready((z1, p1))
    check(z1, p1, "fused")

    # Two-stage fallback path (exercised explicitly).
    z2, p2 = swav_head(x, prep, tile_b=128, force_two_stage=True)
    jax.block_until_ready((z2, p2))
    check(z2, p2, "two-stage")

    print("KERNEL_OK")
</pallas_src>

<mosaic_0001>
module attributes {stable_mosaic.version = 11 : i64} {
  func.func @_fused_kernel(%arg0: i32, %arg1: i32, %arg2: memref<128x256xf32, #tpu.memory_space<vmem>>, %arg3: memref<256x256xbf16, #tpu.memory_space<vmem>>, %arg4: memref<1x256xf32, #tpu.memory_space<vmem>>, %arg5: memref<1x256xf32, #tpu.memory_space<vmem>>, %arg6: memref<1x256xf32, #tpu.memory_space<vmem>>, %arg7: memref<256x128xbf16, #tpu.memory_space<vmem>>, %arg8: memref<1x128xf32, #tpu.memory_space<vmem>>, %arg9: memref<128x128xbf16, #tpu.memory_space<vmem>>, %arg10: memref<128x128xf32, #tpu.memory_space<vmem>>, %arg11: memref<128x128xf32, #tpu.memory_space<vmem>>, %arg12: memref<3x128x256xbf16, #tpu.memory_space<vmem>>, %arg13: memref<1x256xf32, #tpu.memory_space<vmem>>, %arg14: memref<1x256xf32, #tpu.memory_space<vmem>>, %arg15: memref<1x256xf32, #tpu.memory_space<vmem>>, %arg16: memref<1x256xf32, #tpu.memory_space<vmem>>) attributes {dimension_semantics = [#tpu.dimension_semantics<arbitrary>, #tpu.dimension_semantics<arbitrary>], iteration_bounds = array<i64: 2, 3>, scalar_prefetch = 0 : i64, scratch_operands = 5 : i64, tpu.core_type = #tpu.core_type<tc>, window_params = [{transform_indices = @transform_0, window_bounds = array<i64: 128, 256>}, {pipeline_mode = #tpu.pipeline_mode<synchronous>, transform_indices = @transform_1, window_bounds = array<i64: 256, 256>}, {pipeline_mode = #tpu.pipeline_mode<synchronous>, transform_indices = @transform_2, window_bounds = array<i64: 1, 256>}, {pipeline_mode = #tpu.pipeline_mode<synchronous>, transform_indices = @transform_3, window_bounds = array<i64: 1, 256>}, {pipeline_mode = #tpu.pipeline_mode<synchronous>, transform_indices = @transform_4, window_bounds = array<i64: 1, 256>}, {pipeline_mode = #tpu.pipeline_mode<synchronous>, transform_indices = @transform_5, window_bounds = array<i64: 256, 128>}, {pipeline_mode = #tpu.pipeline_mode<synchronous>, transform_indices = @transform_6, window_bounds = array<i64: 1, 128>}, {pipeline_mode = #tpu.pipeline_mode<synchronous>, transform_indices = @transform_7, window_bounds = array<i64: 128, 128>}, {transform_indices = @transform_8, window_bounds = array<i64: 128, 128>}, {transform_indices = @transform_9, window_bounds = array<i64: 128, 128>}]} {
    %c0_i32 = arith.constant 0 : i32
    %0 = arith.cmpi eq, %arg0, %c0_i32 : i32
    %1 = arith.extui %0 : i1 to i32
    %c0_i32_0 = arith.constant 0 : i32
    %2 = arith.cmpi ne, %1, %c0_i32_0 : i32
    scf.if %2 {
      %c0_i32_2 = arith.constant 0 : i32
      %6 = arith.cmpi eq, %arg1, %c0_i32_2 : i32
      %7 = arith.extui %6 : i1 to i32
      %c0_i32_3 = arith.constant 0 : i32
      %8 = arith.cmpi ne, %7, %c0_i32_3 : i32
      scf.if %8 {
        %cst_16 = arith.constant 0.000000e+00 : f32
        %31 = vector.broadcast %cst_16 : f32 to vector<1x256xf32>
        %c0_17 = arith.constant 0 : index
        %c0_18 = arith.constant 0 : index
        %32 = vector.load %arg13[%c0_17, %c0_18] : memref<1x256xf32, #tpu.memory_space<vmem>>, vector<1x256xf32>
        tpu.vector_store %arg13[%c0_17, %c0_18], %31 {strides = array<i32>} : memref<1x256xf32, #tpu.memory_space<vmem>>, vector<1x256xf32>,
        %cst_19 = arith.constant 0.000000e+00 : f32
        %33 = vector.broadcast %cst_19 : f32 to vector<1x256xf32>
        %c0_20 = arith.constant 0 : index
        %c0_21 = arith.constant 0 : index
        %34 = vector.load %arg14[%c0_20, %c0_21] : memref<1x256xf32, #tpu.memory_space<vmem>>, vector<1x256xf32>
        tpu.vector_store %arg14[%c0_20, %c0_21], %33 {strides = array<i32>} : memref<1x256xf32, #tpu.memory_space<vmem>>, vector<1x256xf32>,
      } else {
      }
      %c0 = arith.constant 0 : index
      %c0_4 = arith.constant 0 : index
      %9 = vector.load %arg2[%c0, %c0_4] : memref<128x256xf32, #tpu.memory_space<vmem>>, vector<128x256xf32>
      %10 = arith.truncf %9 : vector<128x256xf32> to vector<128x256xbf16>
      %c0_5 = arith.constant 0 : index
      %c0_6 = arith.constant 0 : index
      %11 = vector.load %arg3[%c0_5, %c0_6] : memref<256x256xbf16, #tpu.memory_space<vmem>>, vector<256x256xbf16>
      %cst = arith.constant dense<0.000000e+00> : vector<128x256xf32>
      %12 = tpu.matmul %10, %11, %cst {dimension_numbers = #tpu.dot_dimension_numbers<[1], [0], [0], [1], [0, 0, 1, 1], [], []>} : vector<128x256xbf16>, vector<256x256xbf16>, vector<128x256xf32> -> vector<128x256xf32>
      %c0_7 = arith.constant 0 : index
      %c0_8 = arith.constant 0 : index
      %13 = vector.load %arg4[%c0_7, %c0_8] : memref<1x256xf32, #tpu.memory_space<vmem>>, vector<1x256xf32>
      %14 = vector.broadcast %13 : vector<1x256xf32> to vector<128x256xf32>
      %15 = arith.addf %12, %14 : vector<128x256xf32>
      %16 = arith.truncf %15 : vector<128x256xf32> to vector<128x256xbf16>
      %17 = arith.index_cast %arg1 : i32 to index
      %c0_9 = arith.constant 0 : index
      %c0_10 = arith.constant 0 : index
      %18 = vector.load %arg12[%17, %c0_9, %c0_10] : memref<3x128x256xbf16, #tpu.memory_space<vmem>>, vector<1x128x256xbf16>
      %19 = vector.shape_cast %18 : vector<1x128x256xbf16> to vector<128x256xbf16>
      %20 = vector.shape_cast %16 : vector<128x256xbf16> to vector<1x128x256xbf16>
      tpu.vector_store %arg12[%17, %c0_9, %c0_10], %20 {strides = array<i32>} : memref<3x128x256xbf16, #tpu.memory_space<vmem>>, vector<1x128x256xbf16>,
      %21 = arith.extf %16 : vector<128x256xbf16> to vector<128x256xf32>
      %c2_i32 = arith.constant 2 : i32
      %22 = arith.cmpi slt, %arg1, %c2_i32 : i32
      %23 = arith.extui %22 : i1 to i32
      %c0_i32_11 = arith.constant 0 : i32
      %24 = arith.cmpi ne, %23, %c0_i32_11 : i32
      scf.if %24 {
        %cst_16 = arith.constant 1.000000e+00 : f32
        %31 = vector.broadcast %cst_16 : f32 to vector<1x128xf32>
        %c0_17 = arith.constant 0 : index
        %c0_18 = arith.constant 0 : index
        %32 = vector.load %arg13[%c0_17, %c0_18] : memref<1x256xf32, #tpu.memory_space<vmem>>, vector<1x256xf32>
        %cst_19 = arith.constant dense<0.000000e+00> : vector<1x256xf32>
        %33 = tpu.matmul %31, %21, %cst_19 {dimension_numbers = #tpu.dot_dimension_numbers<[1], [0], [0], [1], [0, 0, 1, 1], [], []>} : vector<1x128xf32>, vector<128x256xf32>, vector<1x256xf32> -> vector<1x256xf32>
        %34 = arith.addf %32, %33 : vector<1x256xf32>
        %c0_20 = arith.constant 0 : index
        %c0_21 = arith.constant 0 : index
        %35 = vector.load %arg13[%c0_20, %c0_21] : memref<1x256xf32, #tpu.memory_space<vmem>>, vector<1x256xf32>
        tpu.vector_store %arg13[%c0_20, %c0_21], %34 {strides = array<i32>} : memref<1x256xf32, #tpu.memory_space<vmem>>, vector<1x256xf32>,
        %c0_22 = arith.constant 0 : index
        %c0_23 = arith.constant 0 : index
        %36 = vector.load %arg14[%c0_22, %c0_23] : memref<1x256xf32, #tpu.memory_space<vmem>>, vector<1x256xf32>
        %37 = arith.mulf %21, %21 : vector<128x256xf32>
        %cst_24 = arith.constant dense<0.000000e+00> : vector<1x256xf32>
        %38 = tpu.matmul %31, %37, %cst_24 {dimension_numbers = #tpu.dot_dimension_numbers<[1], [0], [0], [1], [0, 0, 1, 1], [], []>} : vector<1x128xf32>, vector<128x256xf32>, vector<1x256xf32> -> vector<1x256xf32>
        %39 = arith.addf %36, %38 : vector<1x256xf32>
        %c0_25 = arith.constant 0 : index
        %c0_26 = arith.constant 0 : index
        %40 = vector.load %arg14[%c0_25, %c0_26] : memref<1x256xf32, #tpu.memory_space<vmem>>, vector<1x256xf32>
        tpu.vector_store %arg14[%c0_25, %c0_26], %39 {strides = array<i32>} : memref<1x256xf32, #tpu.memory_space<vmem>>, vector<1x256xf32>,
      } else {
      }
      %c2_i32_12 = arith.constant 2 : i32
      %25 = arith.cmpi eq, %arg1, %c2_i32_12 : i32
      %26 = arith.extui %25 : i1 to i32
      %c0_i32_13 = arith.constant 0 : i32
      %27 = arith.cmpi ne, %26, %c0_i32_13 : i32
      scf.if %27 {
        %31 = tpu.iota {dimensions = array<i32: 1>} : vector<1x128xi32>
        %c128_i32 = arith.constant 128 : i32
        %32 = arith.muli %arg1, %c128_i32 : i32
        %33 = vector.broadcast %32 : i32 to vector<1x128xi32>
        %34 = arith.addi %31, %33 : vector<1x128xi32>
        %c272_i32 = arith.constant 272 : i32
        %35 = vector.broadcast %c272_i32 : i32 to vector<1x128xi32>
        %36 = arith.cmpi slt, %34, %35 : vector<1x128xi32>
        %37 = arith.extui %36 : vector<1x128xi1> to vector<1x128xi32>
        %38 = arith.sitofp %37 : vector<1x128xi32> to vector<1x128xf32>
        %c0_16 = arith.constant 0 : index
        %c0_17 = arith.constant 0 : index
        %39 = vector.load %arg13[%c0_16, %c0_17] : memref<1x256xf32, #tpu.memory_space<vmem>>, vector<1x256xf32>
        %cst_18 = arith.constant dense<0.000000e+00> : vector<1x256xf32>
        %40 = tpu.matmul %38, %21, %cst_18 {dimension_numbers = #tpu.dot_dimension_numbers<[1], [0], [0], [1], [0, 0, 1, 1], [], []>} : vector<1x128xf32>, vector<128x256xf32>, vector<1x256xf32> -> vector<1x256xf32>
        %41 = arith.addf %39, %40 : vector<1x256xf32>
        %c0_19 = arith.constant 0 : index
        %c0_20 = arith.constant 0 : index
        %42 = vector.load %arg13[%c0_19, %c0_20] : memref<1x256xf32, #tpu.memory_space<vmem>>, vector<1x256xf32>
        tpu.vector_store %arg13[%c0_19, %c0_20], %41 {strides = array<i32>} : memref<1x256xf32, #tpu.memory_space<vmem>>, vector<1x256xf32>,
        %c0_21 = arith.constant 0 : index
        %c0_22 = arith.constant 0 : index
        %43 = vector.load %arg14[%c0_21, %c0_22] : memref<1x256xf32, #tpu.memory_space<vmem>>, vector<1x256xf32>
        %44 = arith.mulf %21, %21 : vector<128x256xf32>
        %cst_23 = arith.constant dense<0.000000e+00> : vector<1x256xf32>
        %45 = tpu.matmul %38, %44, %cst_23 {dimension_numbers = #tpu.dot_dimension_numbers<[1], [0], [0], [1], [0, 0, 1, 1], [], []>} : vector<1x128xf32>, vector<128x256xf32>, vector<1x256xf32> -> vector<1x256xf32>
        %46 = arith.addf %43, %45 : vector<1x256xf32>
        %c0_24 = arith.constant 0 : index
        %c0_25 = arith.constant 0 : index
        %47 = vector.load %arg14[%c0_24, %c0_25] : memref<1x256xf32, #tpu.memory_space<vmem>>, vector<1x256xf32>
        tpu.vector_store %arg14[%c0_24, %c0_25], %46 {strides = array<i32>} : memref<1x256xf32, #tpu.memory_space<vmem>>, vector<1x256xf32>,
      } else {
      }
      %c2_i32_14 = arith.constant 2 : i32
      %28 = arith.cmpi eq, %arg1, %c2_i32_14 : i32
      %29 = arith.extui %28 : i1 to i32
      %c0_i32_15 = arith.constant 0 : i32
      %30 = arith.cmpi ne, %29, %c0_i32_15 : i32
      scf.if %30 {
        %c0_16 = arith.constant 0 : index
        %c0_17 = arith.constant 0 : index
        %31 = vector.load %arg13[%c0_16, %c0_17] : memref<1x256xf32, #tpu.memory_space<vmem>>, vector<1x256xf32>
        %cst_18 = arith.constant 0.0036764706 : f32
        %32 = vector.broadcast %cst_18 : f32 to vector<1x256xf32>
        %33 = arith.mulf %31, %32 : vector<1x256xf32>
        %c0_19 = arith.constant 0 : index
        %c0_20 = arith.constant 0 : index
        %34 = vector.load %arg14[%c0_19, %c0_20] : memref<1x256xf32, #tpu.memory_space<vmem>>, vector<1x256xf32>
        %cst_21 = arith.constant 0.0036764706 : f32
        %35 = vector.broadcast %cst_21 : f32 to vector<1x256xf32>
        %36 = arith.mulf %34, %35 : vector<1x256xf32>
        %37 = arith.mulf %33, %33 : vector<1x256xf32>
        %38 = arith.subf %36, %37 : vector<1x256xf32>
        %cst_22 = arith.constant 0.000000e+00 : f32
        %39 = vector.broadcast %cst_22 : f32 to vector<1x256xf32>
        %40 = arith.maximumf %38, %39 : vector<1x256xf32>
        %c0_23 = arith.constant 0 : index
        %c0_24 = arith.constant 0 : index
        %41 = vector.load %arg5[%c0_23, %c0_24] : memref<1x256xf32, #tpu.memory_space<vmem>>, vector<1x256xf32>
        %cst_25 = arith.constant 9.99999974E-6 : f32
        %42 = vector.broadcast %cst_25 : f32 to vector<1x256xf32>
        %43 = arith.addf %40, %42 : vector<1x256xf32>
        %44 = math.rsqrt %43 : vector<1x256xf32>
        %45 = arith.mulf %41, %44 : vector<1x256xf32>
        %c0_26 = arith.constant 0 : index
        %c0_27 = arith.constant 0 : index
        %46 = vector.load %arg15[%c0_26, %c0_27] : memref<1x256xf32, #tpu.memory_space<vmem>>, vector<1x256xf32>
        tpu.vector_store %arg15[%c0_26, %c0_27], %45 {strides = array<i32>} : memref<1x256xf32, #tpu.memory_space<vmem>>, vector<1x256xf32>,
        %c0_28 = arith.constant 0 : index
        %c0_29 = arith.constant 0 : index
        %47 = vector.load %arg6[%c0_28, %c0_29] : memref<1x256xf32, #tpu.memory_space<vmem>>, vector<1x256xf32>
        %48 = arith.mulf %33, %45 : vector<1x256xf32>
        %49 = arith.subf %47, %48 : vector<1x256xf32>
        %c0_30 = arith.constant 0 : index
        %c0_31 = arith.constant 0 : index
        %50 = vector.load %arg16[%c0_30, %c0_31] : memref<1x256xf32, #tpu.memory_space<vmem>>, vector<1x256xf32>
        tpu.vector_store %arg16[%c0_30, %c0_31], %49 {strides = array<i32>} : memref<1x256xf32, #tpu.memory_space<vmem>>, vector<1x256xf32>,
      } else {
      }
    } else {
    }
    %c1_i32 = arith.constant 1 : i32
    %3 = arith.cmpi eq, %arg0, %c1_i32 : i32
    %4 = arith.extui %3 : i1 to i32
    %c0_i32_1 = arith.constant 0 : i32
    %5 = arith.cmpi ne, %4, %c0_i32_1 : i32
    scf.if %5 {
      %6 = arith.index_cast %arg1 : i32 to index
      %c0 = arith.constant 0 : index
      %c0_2 = arith.constant 0 : index
      %7 = vector.load %arg12[%6, %c0, %c0_2] : memref<3x128x256xbf16, #tpu.memory_space<vmem>>, vector<1x128x256xbf16>
      %8 = vector.shape_cast %7 : vector<1x128x256xbf16> to vector<128x256xbf16>
      %9 = arith.extf %8 : vector<128x256xbf16> to vector<128x256xf32>
      %c0_3 = arith.constant 0 : index
      %c0_4 = arith.constant 0 : index
      %10 = vector.load %arg15[%c0_3, %c0_4] : memref<1x256xf32, #tpu.memory_space<vmem>>, vector<1x256xf32>
      %11 = vector.broadcast %10 : vector<1x256xf32> to vector<128x256xf32>
      %12 = arith.mulf %9, %11 : vector<128x256xf32>
      %c0_5 = arith.constant 0 : index
      %c0_6 = arith.constant 0 : index
      %13 = vector.load %arg16[%c0_5, %c0_6] : memref<1x256xf32, #tpu.memory_space<vmem>>, vector<1x256xf32>
      %14 = vector.broadcast %13 : vector<1x256xf32> to vector<128x256xf32>
      %15 = arith.addf %12, %14 : vector<128x256xf32>
      %cst = arith.constant 0.000000e+00 : f32
      %16 = vector.broadcast %cst : f32 to vector<128x256xf32>
      %17 = arith.maximumf %15, %16 : vector<128x256xf32>
      %18 = arith.truncf %17 : vector<128x256xf32> to vector<128x256xbf16>
      %c0_7 = arith.constant 0 : index
      %c0_8 = arith.constant 0 : index
      %19 = vector.load %arg7[%c0_7, %c0_8] : memref<256x128xbf16, #tpu.memory_space<vmem>>, vector<256x128xbf16>
      %cst_9 = arith.constant dense<0.000000e+00> : vector<128x128xf32>
      %20 = tpu.matmul %18, %19, %cst_9 {dimension_numbers = #tpu.dot_dimension_numbers<[1], [0], [0], [1], [0, 0, 1, 1], [], []>} : vector<128x256xbf16>, vector<256x128xbf16>, vector<128x128xf32> -> vector<128x128xf32>
      %c0_10 = arith.constant 0 : index
      %c0_11 = arith.constant 0 : index
      %21 = vector.load %arg8[%c0_10, %c0_11] : memref<1x128xf32, #tpu.memory_space<vmem>>, vector<1x128xf32>
      %22 = vector.broadcast %21 : vector<1x128xf32> to vector<128x128xf32>
      %23 = arith.addf %20, %22 : vector<128x128xf32>
      %24 = arith.mulf %23, %23 : vector<128x128xf32>
      %cst_12 = arith.constant dense<0.000000e+00> : vector<128xf32>
      %25 = vector.multi_reduction <add>, %24, %cst_12 [1] : vector<128x128xf32> to vector<128xf32>
      %26 = vector.shape_cast %25 : vector<128xf32> to vector<128x1xf32>
      %cst_13 = arith.constant 1.000000e-24 : f32
      %27 = vector.broadcast %cst_13 : f32 to vector<128x1xf32>
      %28 = arith.maximumf %26, %27 : vector<128x1xf32>
      %29 = math.rsqrt %28 : vector<128x1xf32>
      %30 = vector.broadcast %29 : vector<128x1xf32> to vector<128x128xf32>
      %31 = arith.mulf %23, %30 : vector<128x128xf32>
      %c0_14 = arith.constant 0 : index
      %c0_15 = arith.constant 0 : index
      %32 = vector.load %arg10[%c0_14, %c0_15] : memref<128x128xf32, #tpu.memory_space<vmem>>, vector<128x128xf32>
      tpu.vector_store %arg10[%c0_14, %c0_15], %31 {strides = array<i32>} : memref<128x128xf32, #tpu.memory_space<vmem>>, vector<128x128xf32>,
      %33 = arith.truncf %31 : vector<128x128xf32> to vector<128x128xbf16>
      %c0_16 = arith.constant 0 : index
      %c0_17 = arith.constant 0 : index
      %34 = vector.load %arg9[%c0_16, %c0_17] : memref<128x128xbf16, #tpu.memory_space<vmem>>, vector<128x128xbf16>
      %cst_18 = arith.constant dense<0.000000e+00> : vector<128x128xf32>
      %35 = tpu.matmul %33, %34, %cst_18 {dimension_numbers = #tpu.dot_dimension_numbers<[1], [0], [0], [1], [0, 0, 1, 1], [], []>} : vector<128x128xbf16>, vector<128x128xbf16>, vector<128x128xf32> -> vector<128x128xf32>
      %c0_19 = arith.constant 0 : index
      %c0_20 = arith.constant 0 : index
      %36 = vector.load %arg11[%c0_19, %c0_20] : memref<128x128xf32, #tpu.memory_space<vmem>>, vector<128x128xf32>
      tpu.vector_store %arg11[%c0_19, %c0_20], %35 {strides = array<i32>} : memref<128x128xf32, #tpu.memory_space<vmem>>, vector<128x128xf32>,
    } else {
    }
    return
  }
  func.func @transform_0(%arg0: i32, %arg1: i32) -> (i32, i32) {
    %c1_i32 = arith.constant 1 : i32
    %0 = arith.subi %c1_i32, %arg0 : i32
    %1 = arith.muli %arg1, %0 : i32
    %c0_i32 = arith.constant 0 : i32
    %c0_i32_0 = arith.constant 0 : i32
    return %1, %c0_i32 : i32, i32
  }
  func.func @transform_1(%arg0: i32, %arg1: i32) -> (i32, i32) {
    %c0_i32 = arith.constant 0 : i32
    %c0_i32_0 = arith.constant 0 : i32
    %c0_i32_1 = arith.constant 0 : i32
    return %c0_i32, %c0_i32_0 : i32, i32
  }
  func.func @transform_2(%arg0: i32, %arg1: i32) -> (i32, i32) {
    %c0_i32 = arith.constant 0 : i32
    %c0_i32_0 = arith.constant 0 : i32
    %c0_i32_1 = arith.constant 0 : i32
    return %c0_i32, %c0_i32_0 : i32, i32
  }
  func.func @transform_3(%arg0: i32, %arg1: i32) -> (i32, i32) {
    %c0_i32 = arith.constant 0 : i32
    %c0_i32_0 = arith.constant 0 : i32
    %c0_i32_1 = arith.constant 0 : i32
    return %c0_i32, %c0_i32_0 : i32, i32
  }
  func.func @transform_4(%arg0: i32, %arg1: i32) -> (i32, i32) {
    %c0_i32 = arith.constant 0 : i32
    %c0_i32_0 = arith.constant 0 : i32
    %c0_i32_1 = arith.constant 0 : i32
    return %c0_i32, %c0_i32_0 : i32, i32
  }
  func.func @transform_5(%arg0: i32, %arg1: i32) -> (i32, i32) {
    %c0_i32 = arith.constant 0 : i32
    %c0_i32_0 = arith.constant 0 : i32
    %c0_i32_1 = arith.constant 0 : i32
    return %c0_i32, %c0_i32_0 : i32, i32
  }
  func.func @transform_6(%arg0: i32, %arg1: i32) -> (i32, i32) {
    %c0_i32 = arith.constant 0 : i32
    %c0_i32_0 = arith.constant 0 : i32
    %c0_i32_1 = arith.constant 0 : i32
    return %c0_i32, %c0_i32_0 : i32, i32
  }
  func.func @transform_7(%arg0: i32, %arg1: i32) -> (i32, i32) {
    %c0_i32 = arith.constant 0 : i32
    %c0_i32_0 = arith.constant 0 : i32
    %c0_i32_1 = arith.constant 0 : i32
    return %c0_i32, %c0_i32_0 : i32, i32
  }
  func.func @transform_8(%arg0: i32, %arg1: i32) -> (i32, i32) {
    %0 = arith.muli %arg1, %arg0 : i32
    %c0_i32 = arith.constant 0 : i32
    %c0_i32_0 = arith.constant 0 : i32
    return %0, %c0_i32 : i32, i32
  }
  func.func @transform_9(%arg0: i32, %arg1: i32) -> (i32, i32) {
    %0 = arith.muli %arg1, %arg0 : i32
    %c0_i32 = arith.constant 0 : i32
    %c0_i32_0 = arith.constant 0 : i32
    return %0, %c0_i32 : i32, i32
  }
}

</mosaic_0001>

<bundles_post_ra>
// kernel: tpu_custom_call.1
= control target key start
LH: loop header
LB: loop body
LE: loop exit
PB: predicated region body
PF: predicated region fallthrough
CT: control target
= control target key end

     0   :  { %s4123_s0 = inlined_call_operand.hbm [shape: f32[384,256], index: 0, kind: input, shape index: {}]   ;;  %s4124_s1 = inlined_call_operand.hbm [shape: bf16[256,256], index: 1, kind: input, shape index: {}]   ;;  %s4125_s2 = inlined_call_operand.vmem [shape: f32[1,256], index: 2, kind: input, shape index: {}]   ;;  %s4126_s3 = inlined_call_operand.vmem [shape: f32[1,256], index: 3, kind: input, shape index: {}]   ;;  %s4127_s4 = inlined_call_operand.vmem [shape: f32[1,256], index: 4, kind: input, shape index: {}]   ;;  %s4128_s5 = inlined_call_operand.hbm [shape: bf16[256,128], index: 5, kind: input, shape index: {}]   ;;  %s4129_s6 = inlined_call_operand.vmem [shape: f32[1,128], index: 6, kind: input, shape index: {}]   ;;  %s4130_s7 = inlined_call_operand.hbm [shape: bf16[128,128], index: 7, kind: input, shape index: {}]   ;;  %s4131_s8 = inlined_call_operand.hbm [shape: f32[384,128], index: 8, kind: output, shape index: {0}]   ;;  %s4132_s9 = inlined_call_operand.hbm [shape: f32[384,128], index: 9, kind: output, shape index: {1}]  }
   0x1   :  { %4145 = sst [smem:[#allocation30_spill]] %s4124_s1 }
   0x2   :  { %4146 = sst [smem:[#allocation31_spill]] %s4125_s2 }
   0x3   :  { %4147 = sst [smem:[#allocation32_spill]] %s4126_s3 }
   0x4   :  { %4148 = sst [smem:[#allocation33_spill]] %s4127_s4 }
   0x5   :  { %4149 = sst [smem:[#allocation34_spill]] %s4128_s5 }
   0x6   :  { %4150 = sst [smem:[#allocation35_spill]] %s4129_s6 }
   0x7   :  { %4151 = sst [smem:[#allocation36_spill]] %s4130_s7 }
   0x8   :  { %4152 = sst [smem:[#allocation37_spill]] %s4131_s8 }
   0x9   :  { %4153 = sst [smem:[#allocation38_spill]] %s4132_s9 }
   0xa   :  { %15 = vsyncpa [#allocation8], 0 }
   0xb   :  { %17 = vsyncpa [#allocation8 + $0x1], 0 }
   0xc   :  { %18 = vsyncpa [#allocation11], 0 }
   0xd   :  { %19 = vsyncpa [#allocation14], 0 }
   0xe   :  { %20 = vsyncpa [#allocation9], 0 }
   0xf   :  { %22 = vsyncpa [#allocation9 + $0x1], 0 }
  0x10   :  { %23 = vsyncpa [#allocation17], 0 }
  0x11   :  { %25 = vsyncpa [#allocation17 + $0x1], 0  ;;  %s3215_s30 = smov 0   ;;  %s3217_s10 = smov 0  }
  0x12   :  { %s3219_s11 = smov 0   ;;  %s3221_s12 = smov 0  }
  0x13   :  { %s3223_s13 = smov 0   ;;  %s3225_s14 = smov 0  }
  0x14   :  { %s3227_s15 = smov 0   ;;  %s3229_s16 = smov 0  }
  0x15   :  { %s3231_s17 = smov 0   ;;  %s3233_s18 = smov 0  }
  0x16   :  { %s3235_s19 = smov 0  }
  0x17 LB: > { %4154 = sst [smem:[#allocation23_spill]] %s3102_s30  ;;  %s2341_s20 = sadd.s32 4294967295, %s3142_s19   ;;  %s3142_s19 = sphi %s3235_s19, %s31_s19   ;;  %s3138_s18 = sphi %s3233_s18, %s4205_s18   ;;  %s3134_s17 = sphi %s3231_s17, %s4204_s17   ;;  %s3130_s16 = sphi %s3229_s16, %s4197_s16   ;;  %s3126_s15 = sphi %s3227_s15, %s4196_s15   ;;  %s3122_s14 = sphi %s3225_s14, %s4203_s14   ;;  %s3118_s13 = sphi %s3223_s13, %s4202_s13   ;;  %s3114_s12 = sphi %s3221_s12, %s4201_s12   ;;  %s3110_s11 = sphi %s3219_s11, %s4200_s11   ;;  %s3106_s10 = sphi %s3217_s10, %s4199_s10   ;;  %s3102_s30 = sphi %s3215_s30, %s4198_s30  }
  0x18   : > { %4155 = sst [smem:[#allocation24_spill]] %s3126_s15  ;;  %s2342_s21 = sadd.s32 4294967294, %s3142_s19  }
  0x19   : > { %4156 = sst [smem:[#allocation25_spill]] %s3130_s16  ;;  %p67_p0 = scmp.ne.s32.totalorder %s3118_s13, %s3114_s12 }
  0x1a   : > { %4157 = sst [smem:[#allocation26_spill]] %s3134_s17  ;;  %p3271_p1 = scmp.eq.s32.totalorder %s2341_s20, 0 }
  0x1b   : > { %4158 = sst [smem:[#allocation27_spill]] %s3138_s18  ;;  %p239_p2 = scmp.ne.s32.totalorder %s3110_s11, %s3106_s10 }
  0x1c   : > { %s4159_s22 = scalar_select %p3271_p1, 1, 0 }
  0x1d   : > { %p3280_p3 = por %p3271_p1, %p67_p0  ;;  %p240_p4 = scmp.eq.s32.totalorder %s2341_s20, 5 }
  0x1e   : > { %p245_p5 = scmp.ne.s32.totalorder %s3106_s10, %s3102_s30  ;;  %p246_p6 = scmp.eq.s32.totalorder %s2342_s21, 5 }
  0x1f   : > { %p3286_p7 = por %p240_p4, %p239_p2  ;;  %p2343_p8 = scmp.ge.s32.totalorder %s3142_s19, 1 }
  0x20   : > { %p3291_p9 = por %p246_p6, %p245_p5  ;;  %p281_p10 = scmp.lt.s32.totalorder %s3142_s19, 7 }
  0x21   : > { %s4161_s25 = scalar_select %p3286_p7, 1, 0 }
  0x22   : > { %s4163_s26 = scalar_select %p3291_p9, 1, 0 }
  0x23   : > { %4162 = sst [smem:[#allocation28_spill]] %s4161_s25  ;;  %p3296_p11 = pnand %p2343_p8, %p281_p10 }
  0x24   : > { %4164 = sst [smem:[#allocation29_spill]] %s4163_s26  ;;  %s3144_s28 = smov [#allocation10]  }
  0x25   : > { %s293_s29 = sshll.u32 %s3144_s28, 4  ;;  %p2637_p12 = pneg %p3296_p11  ;;  %s294_s29 = int_to_ptr.vmem [resolvable:$true] %s293_s29 }
  0x26   : > { %s3145_s20 = smov [#allocation12]   ;;  %s2889_s23 = scalar_lea.vmem %s294_s29, 4096 }
  0x27   : > { %p3304_p13 = pnand %p2637_p12, %p3271_p1  ;;  %s315_s21 = sshll.u32 %s3145_s20, 4  ;;  %s316_s21 = int_to_ptr.vmem [resolvable:$true] %s315_s21 }
  0x28   : > { %p2890_p2 = scmp.ne.s32.totalorder %s294_s29, %s2889_s23  ;;  %p2897_p6 = scmp.lt.s32.totalorder %s294_s29, %s294_s29 }
  0x29   : > { %p2880_p0 = pneg %p3304_p13  ;;  %p2898_p8 = scmp.lt.s32.totalorder %s2889_s23, %s2889_s23 }
  0x2b   : > { %p2892_p4 = pnand %p2890_p2, %p2880_p0  ;;  %p2899_p10 = por %p2898_p8, %p2897_p6 }
  0x2d   : > { %p2893_p5 = pneg %p2892_p4 }
  0x2f   : > { %p2900_p12 = pnand %p2899_p10, %p2893_p5 }
  0x31   : > { %2903 = shalt.err (!%p2900_p12)
}
  0x32   : > { %s3146_s28 = smov 128   ;;  %s3147_s26 = smov 8  }
  0x33   : > { %s4167_s1 = sld [smem:[#allocation30_spill]]  ;;  %s2915_s9 = scalar_lea.vmem %s316_s21, 2048 }
  0x34   : > { %p2916_p9 = scmp.ne.s32.totalorder %s316_s21, %s2915_s9  ;;  %p2923_p7 = scmp.lt.s32.totalorder %s316_s21, %s316_s21 }
  0x35   : > { %p2924_p1 = scmp.lt.s32.totalorder %s2915_s9, %s2915_s9 }
  0x36   : > { %p2918_p2 = pnand %p2916_p9, %p2880_p0 }
  0x37   : > { %p2925_p6 = por %p2924_p1, %p2923_p7 }
  0x38   : > { %p2919_p4 = pneg %p2918_p2 }
  0x39   : > { %2640 = dma.hbm_to_vmem [thread:$0]  (!%p3304_p13), %s4167_s1, 4096, %s294_s29, [#allocation11], %s3146_s28, %s3146_s28, %s3147_s26  }
  0x3a   : > { %p2926_p5 = pnand %p2925_p6, %p2919_p4 }
  0x3c   : > { %2929 = shalt.err (!%p2926_p5)
}
  0x3d   : > { %s3148_s23 = smov 64   ;;  %s3149_s8 = smov 4  }
  0x3e   : > { %s4168_s5 = sld [smem:[#allocation34_spill]]  ;;  %s3150_s30 = smov [#allocation13]  }
  0x3f   : > { %s331_s26 = sshll.u32 %s3150_s30, 4  ;;  %s332_s26 = int_to_ptr.vmem [resolvable:$true] %s331_s26 }
  0x40   : > { %s2941_s29 = scalar_lea.vmem %s332_s26, 1024  ;;  %p2949_p7 = scmp.lt.s32.totalorder %s332_s26, %s332_s26 }
  0x41   : > { %p2942_p9 = scmp.ne.s32.totalorder %s332_s26, %s2941_s29  ;;  %p2950_p10 = scmp.lt.s32.totalorder %s2941_s29, %s2941_s29 }
  0x43   : > { %p2944_p8 = pnand %p2942_p9, %p2880_p0  ;;  %p2951_p12 = por %p2950_p10, %p2949_p7 }
  0x44   : > { %2643 = dma.hbm_to_vmem [thread:$0]  (!%p3304_p13), %s4168_s5, 2048, %s316_s21, [#allocation11], %s3148_s23, %s3148_s23, %s3149_s8  }
  0x45   : > { %p2945_p1 = pneg %p2944_p8 }
  0x47   : > { %p2952_p2 = pnand %p2951_p12, %p2945_p1 }
  0x49   : > { %2955 = shalt.err (!%p2952_p2)
}
  0x4a   : > { %s4169_s7 = sld [smem:[#allocation36_spill]]  ;;  %s40_s6 = sadd.s32 1, %s3134_s17 }
  0x4b   : > { %p41_p0 = scmp.ge.s32.totalorder %s40_s6, 3  ;;  %s43_s25 = sadd.s32 1, %s3138_s18 }
  0x4c   : > { %s47_s12 = ssub.s32 1, %s3138_s18  ;;  %s54_s21 = sadd.s32 1, %s3122_s14 }
  0x4d   : > { %s4207_s6 = smov (%p41_p0, %s40_s6), 0  ;;  %s4209_s25 = smov (!%p41_p0, %s43_s25), %s3138_s18 }
  0x4e   : > { %s48_s20 = smul.u32 %s3134_s17, %s47_s12  ;;  %p61_p4 = scmp.ne.s32.totalorder %s3122_s14, %s3118_s13 }
  0x4f   : > { %p45_p6 = scmp.ge.s32.totalorder %s4209_s25, 2  ;;  %p62_p5 = scmp.eq.s32.totalorder %s3142_s19, 0 }
  0x50   : > { %2646 = dma.hbm_to_vmem [thread:$0]  (!%p3304_p13), %s4169_s7, 1024, %s332_s26, [#allocation14], %s3148_s23, %s3148_s23, %s3149_s8  }
  0x51   : > { %s224_s30 = smul.u32 %s3134_s17, %s3138_s18  ;;  %p2661_p13 = scmp.lt.s32.totalorder %s3142_s19, 6 }
  0x52   : > { %s4211_s25 = smov (%p45_p6, %s4209_s25), 0  ;;  %p3350_p9 = por %p62_p5, %p61_p4 }
  0x53   : > { %s345_s23 = sand.u32 1, %s3122_s14   ;;  %s49_s26 = ssub.s32 1, %s4211_s25 }
  0x54   : > { %s225_s29 = smul.u32 %s4211_s25, %s4207_s6  ;;  %s2348_s12 = sshll.u32 %s345_s23, 8 }
  0x55   : > { %s50_s9 = smul.u32 %s49_s26, %s4207_s6  ;;  %s4171_s5 = sadd.s32 1, %s3110_s11 }
  0x56   : > { %s226_s28 = ssub.s32 %s224_s30, %s225_s29  ;;  %s2454_s17 = sshll.u32 %s48_s20, 12 }
  0x57   : > { %s51_s1 = ssub.s32 %s48_s20, %s50_s9  ;;  %p227_p8 = scmp.eq.s32.totalorder %s226_s28, 0 }
  0x58   : > { %p52_p1 = scmp.eq.s32.totalorder %s51_s1, 0  ;;  %s349_s4 = scalar_lea.vmem [#allocation7], %s2348_s12 }
  0x59   : > { %s3362_s7 = scalar_select %p227_p8, %s3110_s11, %s4171_s5  }
  0x5a   : > { %s3365_s18 = scalar_select %p52_p1, %s3122_s14, %s54_s21  }
  0x5b   : > { %s359_s3 = sshll.u32 %s349_s4, 4  ;;  %s358_s16 = scalar_lea.hbm %s4123_s0, %s2454_s17  ;;  %s360_s3 = int_to_ptr.vmem [resolvable:$true] %s359_s3 }
  0x5c   : > { %p3374_p7 = pnand %p2661_p13, %p3350_p9  ;;  %s346_s1 = scalar_lea.sflag [#allocation8], %s345_s23 }
  0x5d   : > { %s2969_s5 = scalar_lea.vmem %s360_s3, 4096  ;;  %s3151_s4 = smov [#allocation7]  }
  0x5e   : > { %p2958_p10 = pneg %p3374_p7  ;;  %p2970_p12 = scmp.ne.s32.totalorder %s360_s3, %s2969_s5 }
  0x5f   : > { %s2974_s21 = sshll.u32 %s3151_s4, 4  ;;  %s2975_s21 = int_to_ptr.vmem [resolvable:$false] %s2974_s21 }
  0x60   : > { %p2972_p2 = pnand %p2970_p12, %p2958_p10  ;;  %s2976_s2 = scalar_lea.vmem %s2975_s21, 8192 }
  0x61   : > { %p2977_p4 = scmp.lt.s32.totalorder %s360_s3, %s2975_s21  ;;  %p2978_p6 = scmp.lt.s32.totalorder %s2976_s2, %s2969_s5 }
  0x62   : > { %p2973_p0 = pneg %p2972_p2 }
  0x63   : > { %p2979_p5 = por %p2978_p6, %p2977_p4 }
  0x65   : > { %p2980_p8 = pnand %p2979_p5, %p2973_p0 }
  0x67   : > { %2983 = shalt.err (!%p2980_p8)
}
  0x68   : > { %s3152_s15 = smov 256   ;;  %s3153_s17 = smov 16  }
  0x69   : > { %2650 = dma.hbm_to_vmem [thread:$0]  (!%p3374_p7), %s358_s16, 4096, %s360_s3, %s346_s1, %s3152_s15, %s3152_s15, %s3153_s17  }
  0x6a   : > { %371 = sbr.rel (%p3296_p11) target bundleno = 1680 (0x690), region = 52  ;;  %s373_s20 = sand.u32 (!%p3296_p11), 1, %s3118_s13  }
  0x6b   : > { %s2353_s8 = sshll.u32 (!%p3296_p11), %s373_s20, 8  ;;  %s374_s23 = scalar_lea.sflag (!%p3296_p11), [#allocation8], %s373_s20 }
  0x6c   : > { %s3385_s26 = scalar_lea.vmem (!%p3296_p11), [#allocation7], %s2353_s8 }
  0x6f   : > { %3081 = dma.done.wait (%p3280_p3), %s374_s23, 4096  }
  0x70   : > { %3083 = vsyncadd (%p3280_p3), %s374_s23, 4294963200  ;;  %p4173_p13 = scmp.ne.s32.totalorder %s4159_s22, 0 }
  0x72   : > { %3085 = dma.done.wait (%p4173_p13), [#allocation11], 6144  }
  0x73   : > { %3087 = vsyncadd (%p4173_p13), [#allocation11], 4294961152 }
  0x74   : > { %3089 = dma.done.wait (%p4173_p13), [#allocation14], 1024  }
  0x75   : > { %3091 = vsyncadd (%p4173_p13), [#allocation14], 4294966272  ;;  %s3400_s3 = sand.u32 1, %s3106_s10   ;;  %s4174_s29 = sld [smem:[#allocation25_spill]] }
  0x76   : > { %s2357_s16 = sshll.u32 %s3400_s3, 7 }
  0x77   : > { %s3403_s27 = scalar_lea.vmem [#allocation15], %s2357_s16  ;;  %s3405_s24 = scalar_lea.vmem [#allocation16], %s2357_s16 }
  0x7b   : > { %p2359_p3 = scmp.ne.s32.totalorder %s4174_s29, 0 }
  0x7c   : > { %s4175_s9 = sld [smem:[#allocation24_spill]] (!%p2359_p3) }
  0x7d   : > { %440 = sbr.rel (%p2359_p3) target bundleno = 963 (0x3c3), region = 72 }
  0x82   : > { %p2360_p11 = scmp.ne.s32.totalorder %s4175_s9, 0 }
  0x84   : > { %444 = sbr.rel (%p2360_p11) target bundleno = 141 (0x8d), region = 76 }
  0x89   : > { %v445_v0 = vlaneseq  ;;  %v3154_v1 = vmov 0.0  }
  0x8b   : > { %vm447_vm0 = vcmp.lt.s32.totalorder %v445_v0, 256 }
  0x8c   : > { %449 = vst.msk [vmem:[#allocation3] sm:$0x3] %vm447_vm0, %v3154_v1  ;;  %450 = vst.msk [vmem:[#allocation4] sm:$0x3] %vm447_vm0, %v3154_v1 }
  0x8d PF: > { %v2772_v2 = vld [vmem:[#allocation10 + $0x74] ss:$8 sps:$4 sm:$0xff]   ;;  %v2774_v3 = vld [vmem:[#allocation10 + $0x70] ss:$8 sps:$4 sm:$0xff]   ;;  %v2775_v4 = vld [vmem:[#allocation10 + $0x64] ss:$8 sps:$4 sm:$0xff]  }
  0x8e   : > { %703 = vmatprep.subr.bf16.mxu0 %v2772_v2  ;;  %2587 = vmatprep.subr.bf16.mxu1 %v2772_v2  ;;  %v2777_v5 = vld [vmem:[#allocation10 + $0x60] ss:$8 sps:$4 sm:$0xff]   ;;  %v2778_v6 = vld [vmem:[#allocation10 + $0x54] ss:$8 sps:$4 sm:$0xff]   ;;  %v2780_v7 = vld [vmem:[#allocation10 + $0x50] ss:$8 sps:$4 sm:$0xff]  }
  0x8f   : > { %704 = vmatpush1.bf16.msra.mxu0 %v2774_v3  ;;  %2603 = vmatpush1.bf16.msra.mxu1 %v2774_v3  ;;  %v2781_v8 = vld [vmem:[#allocation10 + $0x44] ss:$8 sps:$4 sm:$0xff]   ;;  %v2783_v9 = vld [vmem:[#allocation10 + $0x40] ss:$8 sps:$4 sm:$0xff]   ;;  %v2784_v10 = vld [vmem:[#allocation10 + $0x34] ss:$8 sps:$4 sm:$0xff]  }
  0x90   : > { %705 = vmatprep.subr.bf16.mxu0 %v2775_v4  ;;  %2588 = vmatprep.subr.bf16.mxu1 %v2775_v4  ;;  %v2786_v11 = vld [vmem:[#allocation10 + $0x30] ss:$8 sps:$4 sm:$0xff]   ;;  %v2787_v12 = vld [vmem:[#allocation10 + $0x24] ss:$8 sps:$4 sm:$0xff]   ;;  %v2789_v13 = vld [vmem:[#allocation10 + $0x20] ss:$8 sps:$4 sm:$0xff]  }
  0x91   : > { %v2790_v14 = vld [vmem:[#allocation10 + $0x14] ss:$8 sps:$4 sm:$0xff]   ;;  %v452_v15 = vld [vmem:[%s3385_s26 + $0x8] sm:$0xff]  ;;  %v2792_v20 = vld [vmem:[#allocation10 + $0x10] ss:$8 sps:$4 sm:$0xff]   ;;  %s4176_s22 = sld [smem:[#allocation24_spill]] }
  0x92   : > { %v454_v16 = vld [vmem:[%s3385_s26 + $0x18] sm:$0xff]  ;;  %v468_v18 = vld [vmem:[%s3385_s26 + $0x88] sm:$0xff]  ;;  %v451_v40 = vld [vmem:[%s3385_s26] sm:$0xff]  ;;  %s4177_s30 = sld [smem:[#allocation31_spill]] }
  0x93   : > { %706 = vmatpush1.bf16.msra.mxu0 %v2777_v5  ;;  %2604 = vmatpush1.bf16.msra.mxu1 %v2777_v5  ;;  %v484_v17 = vpack.c.bf16 %v454_v16, %v452_v15  ;;  %v470_v19 = vld [vmem:[%s3385_s26 + $0x98] sm:$0xff]  ;;  %v2793_v22 = vld [vmem:[#allocation10 + $0x4] ss:$8 sps:$4 sm:$0xff]   ;;  %v2795_v23 = vld [vmem:[#allocation10] ss:$8 sps:$4 sm:$0xff]  }
  0x94   : > { %707 = vmatprep.subr.bf16.mxu0 %v2778_v6  ;;  %2589 = vmatprep.subr.bf16.mxu1 %v2778_v6  ;;  %v492_v21 = vpack.c.bf16 %v470_v19, %v468_v18  ;;  %v2796_v24 = vld [vmem:[#allocation10 + $0xf4] ss:$8 sps:$4 sm:$0xff]   ;;  %v2798_v25 = vld [vmem:[#allocation10 + $0xf0] ss:$8 sps:$4 sm:$0xff]   ;;  %v2799_v26 = vld [vmem:[#allocation10 + $0xe4] ss:$8 sps:$4 sm:$0xff]   ;;  %v533_v18 = vlaneseq }
  0x95   : > { %735 = vmatprep.mubr.bf16.mxu0 %v484_v17  ;;  %v2801_v27 = vld [vmem:[#allocation10 + $0xe0] ss:$8 sps:$4 sm:$0xff]   ;;  %v2802_v28 = vld [vmem:[#allocation10 + $0xd4] ss:$8 sps:$4 sm:$0xff]   ;;  %v2804_v29 = vld [vmem:[#allocation10 + $0xd0] ss:$8 sps:$4 sm:$0xff]  }
  0x96   : > { %775 = vmatprep.mubr.bf16.mxu1 %v492_v21  ;;  %v2805_v30 = vld [vmem:[#allocation10 + $0xc4] ss:$8 sps:$4 sm:$0xff]   ;;  %v2807_v31 = vld [vmem:[#allocation10 + $0xc0] ss:$8 sps:$4 sm:$0xff]   ;;  %v2808_v32 = vld [vmem:[#allocation10 + $0xb4] ss:$8 sps:$4 sm:$0xff]  }
  0x97   : > { %708 = vmatpush1.bf16.msra.mxu0 %v2780_v7  ;;  %2605 = vmatpush1.bf16.msra.mxu1 %v2780_v7  ;;  %v2810_v33 = vld [vmem:[#allocation10 + $0xb0] ss:$8 sps:$4 sm:$0xff]   ;;  %v2811_v34 = vld [vmem:[#allocation10 + $0xa4] ss:$8 sps:$4 sm:$0xff]   ;;  %v2813_v35 = vld [vmem:[#allocation10 + $0xa0] ss:$8 sps:$4 sm:$0xff]  }
  0x98   : > { %709 = vmatprep.subr.bf16.mxu0 %v2781_v8  ;;  %2590 = vmatprep.subr.bf16.mxu1 %v2781_v8  ;;  %v2814_v36 = vld [vmem:[#allocation10 + $0x94] ss:$8 sps:$4 sm:$0xff]   ;;  %v2816_v37 = vld [vmem:[#allocation10 + $0x90] ss:$8 sps:$4 sm:$0xff]   ;;  %v2817_v38 = vld [vmem:[#allocation10 + $0x84] ss:$8 sps:$4 sm:$0xff]  }
  0x99   : > { %v2819_v39 = vld [vmem:[#allocation10 + $0x80] ss:$8 sps:$4 sm:$0xff]   ;;  %v453_v41 = vld [vmem:[%s3385_s26 + $0x10] sm:$0xff]  ;;  %v458_v45 = vld [vmem:[%s3385_s26 + $0x38] sm:$0xff]  ;;  %v3442_v19 = vshrl.u32 %v533_v18, 7  ;;  %s2471_s1 = sshll.u32 %s4176_s22, 7 }
  0x9a   : > { %v467_v42 = vld [vmem:[%s3385_s26 + $0x80] sm:$0xff]  ;;  %v469_v43 = vld [vmem:[%s3385_s26 + $0x90] sm:$0xff]  ;;  %v456_v44 = vld [vmem:[%s3385_s26 + $0x28] sm:$0xff]  ;;  %v483_v48 = vpack.c.bf16 %v453_v41, %v451_v40  ;;  %s3462_s5 = scalar_lea.vmem [#allocation2], %s2471_s1  ;;  %p2411_p9 = scmp.ge.s32.totalorder %s4176_s22, 2 }
  0x9b   : > { %710 = vmatpush1.bf16.msra.mxu0 %v2783_v9  ;;  %2606 = vmatpush1.bf16.msra.mxu1 %v2783_v9  ;;  %v472_v46 = vld [vmem:[%s3385_s26 + $0xa8] sm:$0xff]  ;;  %v474_v47 = vld [vmem:[%s3385_s26 + $0xb8] sm:$0xff]  ;;  %v491_v49 = vpack.c.bf16 %v469_v43, %v467_v42  ;;  %v486_v50 = vpack.c.bf16 %v458_v45, %v456_v44  ;;  %v455_v52 = vld [vmem:[%s3385_s26 + $0x20] sm:$0xff]  ;;  %v539_v21 = vsub.s32 1, %v3442_v19 }
  0x9c   : > { %711 = vmatprep.subr.bf16.mxu0 %v2784_v10  ;;  %2591 = vmatprep.subr.bf16.mxu1 %v2784_v10  ;;  %v494_v51 = vpack.c.bf16 %v474_v47, %v472_v46  ;;  %v457_v53 = vld [vmem:[%s3385_s26 + $0x30] sm:$0xff]  ;;  %v471_v54 = vld [vmem:[%s3385_s26 + $0xa0] sm:$0xff]  ;;  %v460_v56 = vld [vmem:[%s3385_s26 + $0x48] sm:$0xff] }
  0x9d   : > { %v473_v55 = vld [vmem:[%s3385_s26 + $0xb0] sm:$0xff]  ;;  %v462_v57 = vld [vmem:[%s3385_s26 + $0x58] sm:$0xff]  ;;  %v476_v58 = vld [vmem:[%s3385_s26 + $0xc8] sm:$0xff]  ;;  %v485_v60 = vpack.c.bf16 %v457_v53, %v455_v52 }
  0x9e   : > { %v478_v59 = vld [vmem:[%s3385_s26 + $0xd8] sm:$0xff]  ;;  %v493_v61 = vpack.c.bf16 %v473_v55, %v471_v54  ;;  %v488_v62 = vpack.c.bf16 %v462_v57, %v460_v56  ;;  %v459_v0 = vld [vmem:[%s3385_s26 + $0x40] sm:$0xff]  ;;  %v461_v1 = vld [vmem:[%s3385_s26 + $0x50] sm:$0xff] }
  0x9f   : > { %712 = vmatpush1.bf16.msra.mxu0 %v2786_v11  ;;  %2607 = vmatpush1.bf16.msra.mxu1 %v2786_v11  ;;  %v496_v63 = vpack.c.bf16 %v478_v59, %v476_v58  ;;  %v475_v2 = vld [vmem:[%s3385_s26 + $0xc0] sm:$0xff]  ;;  %v477_v3 = vld [vmem:[%s3385_s26 + $0xd0] sm:$0xff]  ;;  %v464_v4 = vld [vmem:[%s3385_s26 + $0x68] sm:$0xff]  ;;  %v487_v8 = vpack.c.bf16 %v461_v1, %v459_v0 }
  0xa0   : > { %713 = vmatprep.subr.bf16.mxu0 %v2787_v12  ;;  %2592 = vmatprep.subr.bf16.mxu1 %v2787_v12  ;;  %v466_v5 = vld [vmem:[%s3385_s26 + $0x78] sm:$0xff]  ;;  %v480_v6 = vld [vmem:[%s3385_s26 + $0xe8] sm:$0xff]  ;;  %v495_v9 = vpack.c.bf16 %v477_v3, %v475_v2  ;;  %v463_v12 = vld [vmem:[%s3385_s26 + $0x60] sm:$0xff] }
  0xa1   : > { %v482_v7 = vld [vmem:[%s3385_s26 + $0xf8] sm:$0xff]  ;;  %v490_v10 = vpack.c.bf16 %v466_v5, %v464_v4  ;;  %v481_v15 = vld [vmem:[%s3385_s26 + $0xf0] sm:$0xff] }
  0xa2   : > { %v498_v11 = vpack.c.bf16 %v482_v7, %v480_v6 }
  0xa3   : > { %714 = vmatpush1.bf16.msra.mxu0 %v2789_v13  ;;  %2608 = vmatpush1.bf16.msra.mxu1 %v2789_v13  ;;  %v465_v13 = vld [vmem:[%s3385_s26 + $0x70] sm:$0xff] }
  0xa4   : > { %715 = vmatprep.subr.bf16.mxu0 %v2790_v14  ;;  %2593 = vmatprep.subr.bf16.mxu1 %v2790_v14  ;;  %v479_v14 = vld [vmem:[%s3385_s26 + $0xe0] sm:$0xff]  ;;  %v489_v16 = vpack.c.bf16 %v465_v13, %v463_v12 }
  0xa5   : > { %v497_v17 = vpack.c.bf16 %v481_v15, %v479_v14 }
  0xa7   : > { %716 = vmatpush1.bf16.msra.mxu0 %v2792_v20  ;;  %2609 = vmatpush1.bf16.msra.mxu1 %v2792_v20  ;;  %v535_v20 = vsub.s32 0, %v3442_v19 }
  0xa8   : > { %717 = vmatprep.subr.bf16.mxu0 %v2793_v22  ;;  %2594 = vmatprep.subr.bf16.mxu1 %v2793_v22  ;;  %v531_v22 = vld [vmem:[%s4177_s30] sm:$0x3] }
  0xab   : > { %718 = vmatpush1.bf16.msra.mxu0 %v2795_v23  ;;  %2610 = vmatpush1.bf16.msra.mxu1 %v2795_v23  ;;  %v3449_v23 = vrot.slane %v531_v22, %v535_v20 }
  0xac   : > { %719 = vmatprep.subr.bf16.mxu0 %v2796_v24  ;;  %2595 = vmatprep.subr.bf16.mxu1 %v2796_v24  ;;  %v3451_v24 = vrot.slane %v531_v22, %v539_v21 }
  0xaf   : > { %720 = vmatpush2.bf16.msra.mxu0 %v2798_v25  ;;  %2611 = vmatpush2.bf16.msra.mxu1 %v2798_v25 }
  0xb0   : > { %721 = vmatprep.subr.bf16.mxu0 %v2799_v26  ;;  %2596 = vmatprep.subr.bf16.mxu1 %v2799_v26 }
  0xb3   : > { %722 = vmatpush2.bf16.msra.mxu0 %v2801_v27  ;;  %2612 = vmatpush2.bf16.msra.mxu1 %v2801_v27 }
  0xb4   : > { %723 = vmatprep.subr.bf16.mxu0 %v2802_v28  ;;  %2597 = vmatprep.subr.bf16.mxu1 %v2802_v28 }
  0xb7   : > { %724 = vmatpush2.bf16.msra.mxu0 %v2804_v29  ;;  %2613 = vmatpush2.bf16.msra.mxu1 %v2804_v29 }
  0xb8   : > { %725 = vmatprep.subr.bf16.mxu0 %v2805_v30  ;;  %2598 = vmatprep.subr.bf16.mxu1 %v2805_v30 }
  0xbb   : > { %726 = vmatpush2.bf16.msra.mxu0 %v2807_v31  ;;  %2614 = vmatpush2.bf16.msra.mxu1 %v2807_v31 }
  0xbc   : > { %727 = vmatprep.subr.bf16.mxu0 %v2808_v32  ;;  %2599 = vmatprep.subr.bf16.mxu1 %v2808_v32 }
  0xbf   : > { %728 = vmatpush2.bf16.msra.mxu0 %v2810_v33  ;;  %2615 = vmatpush2.bf16.msra.mxu1 %v2810_v33 }
  0xc0   : > { %729 = vmatprep.subr.bf16.mxu0 %v2811_v34  ;;  %2600 = vmatprep.subr.bf16.mxu1 %v2811_v34 }
  0xc3   : > { %730 = vmatpush2.bf16.msra.mxu0 %v2813_v35  ;;  %2616 = vmatpush2.bf16.msra.mxu1 %v2813_v35 }
  0xc4   : > { %731 = vmatprep.subr.bf16.mxu0 %v2814_v36  ;;  %2601 = vmatprep.subr.bf16.mxu1 %v2814_v36 }
  0xc7   : > { %732 = vmatpush2.bf16.msra.mxu0 %v2816_v37  ;;  %2617 = vmatpush2.bf16.msra.mxu1 %v2816_v37 }
  0xc8   : > { %733 = vmatprep.subr.bf16.mxu0 %v2817_v38  ;;  %2602 = vmatprep.subr.bf16.mxu1 %v2817_v38 }
  0xcb   : > { %734 = vmatpush2.bf16.msra.mxu0 %v2819_v39  ;;  %2618 = vmatpush2.bf16.msra.mxu1 %v2819_v39 }
  0xce   : > { %736 = vmatmul.mubr.bf16.vlgmr.msra.gmra.mxu0 %v483_v48  ;;  %776 = vmatmul.mubr.bf16.vlgmr.msra.gmra.mxu1 %v491_v49 }
  0xcf   : > { %745 = vmatprep.mubr.bf16.mxu0 %v486_v50  ;;  %785 = vmatprep.mubr.bf16.mxu1 %v494_v51 }
  0xd6   : > { %746 = vmatmul.mubr.bf16.gmra.mxu0 %v485_v60  ;;  %786 = vmatmul.mubr.bf16.gmra.mxu1 %v493_v61 }
  0xd7   : > { %755 = vmatprep.mubr.bf16.mxu0 %v488_v62  ;;  %795 = vmatprep.mubr.bf16.mxu1 %v496_v63 }
  0xde   : > { %756 = vmatmul.mubr.bf16.gmra.mxu0 %v487_v8  ;;  %796 = vmatmul.mubr.bf16.gmra.mxu1 %v495_v9 }
  0xdf   : > { %765 = vmatprep.mubr.bf16.mxu0 %v490_v10  ;;  %805 = vmatprep.mubr.bf16.mxu1 %v498_v11 }
  0xe6   : > { %766 = vmatmul.mubr.bf16.gmra.mxu0 %v489_v16  ;;  %806 = vmatmul.mubr.bf16.gmra.mxu1 %v497_v17 }
 0x18e   : > { %v737_v25 = vpop.f32.mrf.mxu0  ;;  %v777_v26 = vpop.f32.mrf.mxu1 }
 0x18f   : > { %v738_v29 = vadd.f32 %v737_v25, %v3449_v23  ;;  %v778_v30 = vadd.f32 %v777_v26, %v3449_v23 }
 0x190   : > { %v739_v27 = vpop.f32.mrf.mxu0  ;;  %v779_v28 = vpop.f32.mrf.mxu1 }
 0x191   : > { %v740_v31 = vadd.f32 %v739_v27, %v3451_v24  ;;  %v780_v32 = vadd.f32 %v779_v28, %v3451_v24 }
 0x192   : > { %v741_v33 = vpop.f32.mrf.mxu0  ;;  %v781_v34 = vpop.f32.mrf.mxu1 }
 0x193   : > { %v2455_v35 = vpack.c.bf16 %v740_v31, %v738_v29  ;;  %v2463_v36 = vpack.c.bf16 %v780_v32, %v778_v30  ;;  %v742_v37 = vadd.f32 %v741_v33, %v3449_v23  ;;  %v782_v38 = vadd.f32 %v781_v34, %v3449_v23 }
 0x194   : > { %v743_v39 = vpop.f32.mrf.mxu0  ;;  %v783_v40 = vpop.f32.mrf.mxu1 }
 0x195   : > { %915 = vst [vmem:[%s3462_s5] sm:$0xff] %v2455_v35  ;;  %923 = vst [vmem:[%s3462_s5 + $0x40] sm:$0xff] %v2463_v36  ;;  %v816_v41 = vpack.c.bf16 %v742_v37, %v738_v29  ;;  %v824_v42 = vpack.c.bf16 %v782_v38, %v778_v30  ;;  %v744_v43 = vadd.f32 %v743_v39, %v3451_v24 }
 0x196   : > { %v784_v44 = vadd.f32 %v783_v40, %v3451_v24  ;;  %v747_v45 = vpop.f32.mrf.mxu0  ;;  %v787_v46 = vpop.f32.mrf.mxu1 }
 0x197   : > { %v3468_v47 = vunpack.c.l.bf16 %v816_v41  ;;  %v3470_v48 = vunpack.c.h.bf16 %v816_v41  ;;  %v3472_v49 = vunpack.c.l.bf16 %v824_v42  ;;  %v3474_v50 = vunpack.c.h.bf16 %v824_v42 }
 0x198   : > { %v817_v51 = vpack.c.bf16 %v744_v43, %v740_v31  ;;  %v2456_v52 = vpack.c.bf16 %v744_v43, %v742_v37  ;;  %v825_v53 = vpack.c.bf16 %v784_v44, %v780_v32  ;;  %v2464_v54 = vpack.c.bf16 %v784_v44, %v782_v38  ;;  %v749_v55 = vpop.f32.mrf.mxu0  ;;  %v789_v56 = vpop.f32.mrf.mxu1 }
 0x199   : > { %v748_v57 = vadd.f32 %v747_v45, %v3449_v23  ;;  %v788_v58 = vadd.f32 %v787_v46, %v3449_v23  ;;  %v750_v59 = vadd.f32 %v749_v55, %v3451_v24  ;;  %v790_v60 = vadd.f32 %v789_v56, %v3451_v24 }
 0x19a   : > { %916 = vst [vmem:[%s3462_s5 + $0x8] sm:$0xff] %v2456_v52  ;;  %v3481_v61 = vunpack.c.l.bf16 %v817_v51  ;;  %v3483_v62 = vunpack.c.h.bf16 %v817_v51  ;;  %924 = vst [vmem:[%s3462_s5 + $0x48] sm:$0xff] %v2464_v54  ;;  %v3486_v63 = vunpack.c.l.bf16 %v825_v53  ;;  %v3488_v0 = vunpack.c.h.bf16 %v825_v53  ;;  %v751_v1 = vpop.f32.mrf.mxu0  ;;  %v791_v2 = vpop.f32.mrf.mxu1 }
 0x19b   : > { %v2457_v3 = vpack.c.bf16 %v750_v59, %v748_v57  ;;  %v2465_v4 = vpack.c.bf16 %v790_v60, %v788_v58  ;;  %v752_v5 = vadd.f32 %v751_v1, %v3449_v23  ;;  %v792_v6 = vadd.f32 %v791_v2, %v3449_v23 }
 0x19c   : > { %v753_v7 = vpop.f32.mrf.mxu0  ;;  %v793_v8 = vpop.f32.mrf.mxu1 }
 0x19d   : > { %917 = vst [vmem:[%s3462_s5 + $0x10] sm:$0xff] %v2457_v3  ;;  %925 = vst [vmem:[%s3462_s5 + $0x50] sm:$0xff] %v2465_v4  ;;  %v818_v9 = vpack.c.bf16 %v752_v5, %v748_v57  ;;  %v826_v10 = vpack.c.bf16 %v792_v6, %v788_v58  ;;  %v754_v11 = vadd.f32 %v753_v7, %v3451_v24 }
 0x19e   : > { %v794_v12 = vadd.f32 %v793_v8, %v3451_v24  ;;  %v757_v13 = vpop.f32.mrf.mxu0  ;;  %v797_v14 = vpop.f32.mrf.mxu1 }
 0x19f   : > { %v3496_v15 = vunpack.c.l.bf16 %v818_v9  ;;  %v3498_v16 = vunpack.c.h.bf16 %v818_v9  ;;  %v3500_v17 = vunpack.c.l.bf16 %v826_v10  ;;  %v3502_v20 = vunpack.c.h.bf16 %v826_v10 }
 0x1a0   : > { %v819_v21 = vpack.c.bf16 %v754_v11, %v750_v59  ;;  %v2458_v22 = vpack.c.bf16 %v754_v11, %v752_v5  ;;  %v827_v25 = vpack.c.bf16 %v794_v12, %v790_v60  ;;  %v2466_v26 = vpack.c.bf16 %v794_v12, %v792_v6  ;;  %v759_v27 = vpop.f32.mrf.mxu0  ;;  %v799_v28 = vpop.f32.mrf.mxu1 }
 0x1a1   : > { %v758_v29 = vadd.f32 %v757_v13, %v3449_v23  ;;  %v798_v30 = vadd.f32 %v797_v14, %v3449_v23  ;;  %v760_v31 = vadd.f32 %v759_v27, %v3451_v24  ;;  %v800_v32 = vadd.f32 %v799_v28, %v3451_v24 }
 0x1a2   : > { %918 = vst [vmem:[%s3462_s5 + $0x18] sm:$0xff] %v2458_v22  ;;  %v3509_v33 = vunpack.c.l.bf16 %v819_v21  ;;  %v3511_v34 = vunpack.c.h.bf16 %v819_v21  ;;  %926 = vst [vmem:[%s3462_s5 + $0x58] sm:$0xff] %v2466_v26  ;;  %v3514_v35 = vunpack.c.l.bf16 %v827_v25  ;;  %v3516_v36 = vunpack.c.h.bf16 %v827_v25  ;;  %v761_v37 = vpop.f32.mrf.mxu0  ;;  %v801_v38 = vpop.f32.mrf.mxu1 }
 0x1a3   : > { %v2459_v39 = vpack.c.bf16 %v760_v31, %v758_v29  ;;  %v2467_v40 = vpack.c.bf16 %v800_v32, %v798_v30  ;;  %v762_v41 = vadd.f32 %v761_v37, %v3449_v23  ;;  %v802_v42 = vadd.f32 %v801_v38, %v3449_v23 }
 0x1a4   : > { %v763_v43 = vpop.f32.mrf.mxu0  ;;  %v803_v44 = vpop.f32.mrf.mxu1 }
 0x1a5   : > { %919 = vst [vmem:[%s3462_s5 + $0x20] sm:$0xff] %v2459_v39  ;;  %927 = vst [vmem:[%s3462_s5 + $0x60] sm:$0xff] %v2467_v40  ;;  %v820_v45 = vpack.c.bf16 %v762_v41, %v758_v29  ;;  %v828_v46 = vpack.c.bf16 %v802_v42, %v798_v30  ;;  %v764_v51 = vadd.f32 %v763_v43, %v3451_v24 }
 0x1a6   : > { %v804_v52 = vadd.f32 %v803_v44, %v3451_v24  ;;  %v767_v53 = vpop.f32.mrf.mxu0  ;;  %v807_v54 = vpop.f32.mrf.mxu1 }
 0x1a7   : > { %v3524_v55 = vunpack.c.l.bf16 %v820_v45  ;;  %v3526_v56 = vunpack.c.h.bf16 %v820_v45  ;;  %v3528_v57 = vunpack.c.l.bf16 %v828_v46  ;;  %v3530_v58 = vunpack.c.h.bf16 %v828_v46 }
 0x1a8   : > { %v821_v59 = vpack.c.bf16 %v764_v51, %v760_v31  ;;  %v2460_v60 = vpack.c.bf16 %v764_v51, %v762_v41  ;;  %v829_v1 = vpack.c.bf16 %v804_v52, %v800_v32  ;;  %v2468_v2 = vpack.c.bf16 %v804_v52, %v802_v42  ;;  %v769_v3 = vpop.f32.mrf.mxu0  ;;  %v809_v4 = vpop.f32.mrf.mxu1 }
 0x1a9   : > { %v768_v5 = vadd.f32 %v767_v53, %v3449_v23  ;;  %v808_v6 = vadd.f32 %v807_v54, %v3449_v23  ;;  %v770_v7 = vadd.f32 %v769_v3, %v3451_v24  ;;  %v810_v8 = vadd.f32 %v809_v4, %v3451_v24 }
 0x1aa   : > { %920 = vst [vmem:[%s3462_s5 + $0x28] sm:$0xff] %v2460_v60  ;;  %v3537_v9 = vunpack.c.l.bf16 %v821_v59  ;;  %v3539_v10 = vunpack.c.h.bf16 %v821_v59  ;;  %928 = vst [vmem:[%s3462_s5 + $0x68] sm:$0xff] %v2468_v2  ;;  %v3542_v11 = vunpack.c.l.bf16 %v829_v1  ;;  %v3544_v12 = vunpack.c.h.bf16 %v829_v1  ;;  %v771_v13 = vpop.f32.mrf.mxu0  ;;  %v811_v14 = vpop.f32.mrf.mxu1 }
 0x1ab   : > { %v2461_v21 = vpack.c.bf16 %v770_v7, %v768_v5  ;;  %v2469_v22 = vpack.c.bf16 %v810_v8, %v808_v6  ;;  %v772_v25 = vadd.f32 %v771_v13, %v3449_v23  ;;  %v812_v26 = vadd.f32 %v811_v14, %v3449_v23 }
 0x1ac   : > { %v773_v27 = vpop.f32.mrf.mxu0  ;;  %v813_v28 = vpop.f32.mrf.mxu1 }
 0x1ad   : > { %921 = vst [vmem:[%s3462_s5 + $0x30] sm:$0xff] %v2461_v21  ;;  %929 = vst [vmem:[%s3462_s5 + $0x70] sm:$0xff] %v2469_v22  ;;  %v822_v29 = vpack.c.bf16 %v772_v25, %v768_v5  ;;  %v830_v30 = vpack.c.bf16 %v812_v26, %v808_v6  ;;  %v774_v31 = vadd.f32 %v773_v27, %v3451_v24 }
 0x1ae   : > { %v814_v32 = vadd.f32 %v813_v28, %v3451_v24  ;;  %966 = sbr.rel (%p2411_p9) target bundleno = 675 (0x2a3), region = 80 }
 0x1af   : > { %v3552_v37 = vunpack.c.l.bf16 %v822_v29  ;;  %v3554_v38 = vunpack.c.h.bf16 %v822_v29  ;;  %v3556_v39 = vunpack.c.l.bf16 %v830_v30  ;;  %v3558_v40 = vunpack.c.h.bf16 %v830_v30 }
 0x1b0   : > { %v823_v23 = vpack.c.bf16 %v774_v31, %v770_v7  ;;  %v2462_v41 = vpack.c.bf16 %v774_v31, %v772_v25  ;;  %v831_v42 = vpack.c.bf16 %v814_v32, %v810_v8  ;;  %v2470_v43 = vpack.c.bf16 %v814_v32, %v812_v26 }
 0x1b2   : > { %922 = vst [vmem:[%s3462_s5 + $0x38] sm:$0xff] %v2462_v41  ;;  %v3561_v44 = vunpack.c.l.bf16 %v823_v23  ;;  %v3563_v45 = vunpack.c.h.bf16 %v823_v23  ;;  %930 = vst [vmem:[%s3462_s5 + $0x78] sm:$0xff] %v2470_v43  ;;  %v3566_v46 = vunpack.c.l.bf16 %v831_v42  ;;  %v3568_v24 = vunpack.c.h.bf16 %v831_v42 }
 0x1b3   : > { %v1094_v52 = vmul.f32 %v3558_v40, %v3558_v40  ;;  %v1092_v54 = vmul.f32 %v3556_v39, %v3556_v39  ;;  %v1091_v59 = vmul.f32 %v3544_v12, %v3544_v12  ;;  %v1090_v60 = vmul.f32 %v3530_v58, %v3530_v58 }
 0x1b4   : > { %968 = vmatprep.subr.mxu0 %v3568_v24  ;;  %v1095_v51 = vmul.f32 %v3568_v24, %v3568_v24  ;;  %v1093_v53 = vmul.f32 %v3566_v46, %v3566_v46  ;;  %v1089_v1 = vmul.f32 %v3542_v11, %v3542_v11  ;;  %v1088_v2 = vmul.f32 %v3528_v57, %v3528_v57 }
 0x1b5   : > { %969 = vmatpush1.msra.mxu0 %v3558_v40  ;;  %v1087_v3 = vmul.f32 %v3516_v36, %v3516_v36  ;;  %v1086_v4 = vmul.f32 %v3502_v20, %v3502_v20  ;;  %v1085_v5 = vmul.f32 %v3514_v35, %v3514_v35  ;;  %v1084_v6 = vmul.f32 %v3500_v17, %v3500_v17 }
 0x1b6   : > { %970 = vmatprep.subr.mxu0 %v3566_v46  ;;  %1096 = vmatprep.subr.mxu1 %v1095_v51  ;;  %v1083_v7 = vmul.f32 %v3488_v0, %v3488_v0  ;;  %v1082_v8 = vmul.f32 %v3474_v50, %v3474_v50  ;;  %v1081_v13 = vmul.f32 %v3486_v63, %v3486_v63  ;;  %vm1060_vm1 = vcmp.lt.s32.totalorder %v533_v18, 256 }
 0x1b7   : > { %971 = vmatpush1.msra.mxu0 %v3556_v39  ;;  %1097 = vmatpush1.msra.mxu1 %v1094_v52  ;;  %v1080_v14 = vmul.f32 %v3472_v49, %v3472_v49  ;;  %v1079_v21 = vmul.f32 %v3563_v45, %v3563_v45  ;;  %v1078_v22 = vmul.f32 %v3554_v38, %v3554_v38 }
 0x1b8   : > { %972 = vmatprep.subr.mxu0 %v3544_v12  ;;  %1098 = vmatprep.subr.mxu1 %v1093_v53  ;;  %v1077_v25 = vmul.f32 %v3561_v44, %v3561_v44  ;;  %v1076_v26 = vmul.f32 %v3552_v37, %v3552_v37  ;;  %v1075_v27 = vmul.f32 %v3539_v10, %v3539_v10  ;;  %v3155_v53 = vmov 0.0  }
 0x1b9   : > { %973 = vmatpush1.msra.mxu0 %v3530_v58  ;;  %1099 = vmatpush1.msra.mxu1 %v1092_v54  ;;  %v1074_v28 = vmul.f32 %v3526_v56, %v3526_v56  ;;  %v1073_v29 = vmul.f32 %v3537_v9, %v3537_v9  ;;  %v1072_v30 = vmul.f32 %v3524_v55, %v3524_v55  ;;  %v3156_v54 = vmov 1.0  }
 0x1ba   : > { %974 = vmatprep.subr.mxu0 %v3542_v11  ;;  %1100 = vmatprep.subr.mxu1 %v1091_v59  ;;  %v1071_v31 = vmul.f32 %v3511_v34, %v3511_v34  ;;  %v1070_v32 = vmul.f32 %v3498_v16, %v3498_v16  ;;  %v1069_v23 = vmul.f32 %v3509_v33, %v3509_v33  ;;  %v3157_v59 = vmov 1966171168  }
 0x1bb   : > { %975 = vmatpush1.msra.mxu0 %v3528_v57  ;;  %1101 = vmatpush1.msra.mxu1 %v1090_v60  ;;  %v1068_v41 = vmul.f32 %v3496_v15, %v3496_v15  ;;  %v1067_v42 = vmul.f32 %v3483_v62, %v3483_v62  ;;  %v1066_v43 = vmul.f32 %v3470_v48, %v3470_v48  ;;  %v1043_v60 = vunpack.c.l.s4 %v3157_v59 }
 0x1bc   : > { %976 = vmatprep.subr.mxu0 %v3516_v36  ;;  %1102 = vmatprep.subr.mxu1 %v1089_v1  ;;  %v1065_v51 = vmul.f32 %v3481_v61, %v3481_v61  ;;  %v1064_v52 = vmul.f32 %v3468_v47, %v3468_v47 }
 0x1bd   : > { %977 = vmatpush1.msra.mxu0 %v3502_v20  ;;  %1103 = vmatpush1.msra.mxu1 %v1088_v2  ;;  %v1044_v1 = vunpack.c.0.s8 %v1043_v60 }
 0x1be   : > { %978 = vmatprep.subr.mxu0 %v3514_v35  ;;  %1104 = vmatprep.subr.mxu1 %v1087_v3 }
 0x1bf   : > { %979 = vmatpush1.msra.mxu0 %v3500_v17  ;;  %1105 = vmatpush1.msra.mxu1 %v1086_v4  ;;  %v1047_v3 = vsub.s32 %v1044_v1, %v3442_v19 }
 0x1c0   : > { %980 = vmatprep.subr.mxu0 %v3488_v0  ;;  %1106 = vmatprep.subr.mxu1 %v1085_v5 }
 0x1c1   : > { %981 = vmatpush1.msra.mxu0 %v3474_v50  ;;  %1107 = vmatpush1.msra.mxu1 %v1084_v6 }
 0x1c2   : > { %982 = vmatprep.subr.mxu0 %v3486_v63  ;;  %1108 = vmatprep.subr.mxu1 %v1083_v7 }
 0x1c3   : > { %983 = vmatpush1.msra.mxu0 %v3472_v49  ;;  %1109 = vmatpush1.msra.mxu1 %v1082_v8 }
 0x1c4   : > { %984 = vmatprep.subr.mxu0 %v3563_v45  ;;  %1110 = vmatprep.subr.mxu1 %v1081_v13  ;;  %v967_v13 = vld [vmem:[#allocation3] sm:$0x3] }
 0x1c5   : > { %985 = vmatpush1.msra.mxu0 %v3554_v38  ;;  %1111 = vmatpush1.msra.mxu1 %v1080_v14 }
 0x1c6   : > { %986 = vmatprep.subr.mxu0 %v3561_v44  ;;  %1112 = vmatprep.subr.mxu1 %v1079_v21 }
 0x1c7   : > { %987 = vmatpush1.msra.mxu0 %v3552_v37  ;;  %1113 = vmatpush1.msra.mxu1 %v1078_v22 }
 0x1c8   : > { %988 = vmatprep.subr.mxu0 %v3539_v10  ;;  %1114 = vmatprep.subr.mxu1 %v1077_v25 }
 0x1c9   : > { %989 = vmatpush1.msra.mxu0 %v3526_v56  ;;  %1115 = vmatpush1.msra.mxu1 %v1076_v26  ;;  %v1063_v26 = vld [vmem:[#allocation4] sm:$0x3] }
 0x1ca   : > { %990 = vmatprep.subr.mxu0 %v3537_v9  ;;  %1116 = vmatprep.subr.mxu1 %v1075_v27 }
 0x1cb   : > { %991 = vmatpush1.msra.mxu0 %v3524_v55  ;;  %1117 = vmatpush1.msra.mxu1 %v1074_v28 }
 0x1cc   : > { %992 = vmatprep.subr.mxu0 %v3511_v34  ;;  %1118 = vmatprep.subr.mxu1 %v1073_v29 }
 0x1cd   : > { %993 = vmatpush1.msra.mxu0 %v3498_v16  ;;  %1119 = vmatpush1.msra.mxu1 %v1072_v30 }
 0x1ce   : > { %994 = vmatprep.subr.mxu0 %v3509_v33  ;;  %1120 = vmatprep.subr.mxu1 %v1071_v31 }
 0x1cf   : > { %995 = vmatpush1.msra.mxu0 %v3496_v15  ;;  %1121 = vmatpush1.msra.mxu1 %v1070_v32 }
 0x1d0   : > { %996 = vmatprep.subr.mxu0 %v3483_v62  ;;  %1122 = vmatprep.subr.mxu1 %v1069_v23 }
 0x1d1   : > { %997 = vmatpush1.msra.mxu0 %v3470_v48  ;;  %1123 = vmatpush1.msra.mxu1 %v1068_v41 }
 0x1d2   : > { %998 = vmatprep.subr.mxu0 %v3481_v61  ;;  %1124 = vmatprep.subr.mxu1 %v1067_v42 }
 0x1d3   : > { %999 = vmatpush1.msra.mxu0 %v3468_v47  ;;  %1032 = vmatprep.mubr.f32.mxu0 %v3155_v53 }
 0x1d4   : > { %1125 = vmatpush1.msra.mxu1 %v1066_v43  ;;  %1033 = vmatmul.mubr.f32.vlgmr.msra.gmra.mxu0 %v3156_v54 }
 0x1d5   : > { %1126 = vmatprep.subr.mxu1 %v1065_v51  ;;  %1160 = vmatprep.mubr.f32.mxu1 %v3155_v53 }
 0x1d6   : > { %1127 = vmatpush1.msra.mxu1 %v1064_v52 }
 0x1d7   : > { %1161 = vmatmul.mubr.f32.vlgmr.msra.gmra.mxu1 %v3156_v54 }
 0x294   : > { %v1034_v2 = vpop.f32.mrf.mxu0 }
 0x296   : > { %v1036_v4 = vpop.f32.mrf.mxu0 }
 0x297   : > { %v1041_v5 = vcombine.low %v1034_v2, %v1036_v4  ;;  %v1162_v6 = vpop.f32.mrf.mxu1 }
 0x299   : > { %v1048_v7 = vrot.slane %v1041_v5, %v1047_v3  ;;  %v1164_v8 = vpop.f32.mrf.mxu1 }
 0x29a   : > { %v1169_v14 = vcombine.low %v1162_v6, %v1164_v8 }
 0x29b   : > { %v1055_v21 = vrot.slane %v1048_v7, %v1047_v3 }
 0x29c   : > { %v1176_v22 = vrot.slane %v1169_v14, %v1047_v3 }
 0x29d   : > { %v1057_v25 = vadd.f32 %v1055_v21, %v967_v13 }
 0x29e   : > { %v1183_v27 = vrot.slane %v1176_v22, %v1047_v3 }
 0x29f   : > { %1062 = vst.msk [vmem:[#allocation3] sm:$0x3] %vm1060_vm1, %v1057_v25 }
 0x2a0   : > { %v1185_v28 = vadd.f32 %v1183_v27, %v1063_v26 }
 0x2a2   : > { %1186 = vst.msk [vmem:[#allocation4] sm:$0x3] %vm1060_vm1, %v1185_v28 }
 0x2a3 PF: > { %s4178_s4 = sld [smem:[#allocation24_spill]] }
 0x2a9   : > { %p2412_p1 = scmp.ne.s32.totalorder %s4178_s4, 2 }
 0x2aa   : > { %s4182_s17 = sld [smem:[#allocation32_spill]] (!%p2412_p1) }
 0x2ab   : > { %1190 = sbr.rel (%p2412_p1) target bundleno = 963 (0x3c3), region = 84  ;;  %s4183_s23 = sld [smem:[#allocation33_spill]] (!%p2412_p1) }
 0x2b0   : > { %1200 = vmatprep.subr.mxu0 %v3568_v24  ;;  %v1327_v29 = vmul.f32 %v3568_v24, %v3568_v24  ;;  %v1326_v30 = vmul.f32 %v3558_v40, %v3558_v40  ;;  %v1325_v31 = vmul.f32 %v3566_v46, %v3566_v46  ;;  %v1324_v32 = vmul.f32 %v3556_v39, %v3556_v39  ;;  %v1199_v2 = vld [vmem:[#allocation3] sm:$0x3]  ;;  %v1295_v8 = vld [vmem:[#allocation4] sm:$0x3] }
 0x2b1   : > { %1201 = vmatpush1.msra.mxu0 %v3558_v40  ;;  %v1323_v23 = vmul.f32 %v3544_v12, %v3544_v12  ;;  %v1322_v24 = vmul.f32 %v3530_v58, %v3530_v58  ;;  %v1321_v40 = vmul.f32 %v3542_v11, %v3542_v11  ;;  %v1192_v41 = vand.u32 127, %v533_v18 }
 0x2b2   : > { %1202 = vmatprep.subr.mxu0 %v3566_v46  ;;  %1328 = vmatprep.subr.mxu1 %v1327_v29  ;;  %v1320_v46 = vmul.f32 %v3528_v57, %v3528_v57  ;;  %v1301_v42 = vmul.f32 %v3509_v33, %v3509_v33  ;;  %vm3771_vm3 = vcmp.lt.s32.totalorder %v533_v18, 256  ;;  %v1426_v29 = vld [vmem:[%s4182_s17] sm:$0x3] }
 0x2b3   : > { %1203 = vmatpush1.msra.mxu0 %v3556_v39  ;;  %1329 = vmatpush1.msra.mxu1 %v1326_v30  ;;  %v1319_v39 = vmul.f32 %v3516_v36, %v3516_v36 }
 0x2b4   : > { %1204 = vmatprep.subr.mxu0 %v3544_v12  ;;  %1330 = vmatprep.subr.mxu1 %v1325_v31  ;;  %v1318_v12 = vmul.f32 %v3502_v20, %v3502_v20 }
 0x2b5   : > { %1205 = vmatpush1.msra.mxu0 %v3530_v58  ;;  %1331 = vmatpush1.msra.mxu1 %v1324_v32  ;;  %v1317_v58 = vmul.f32 %v3514_v35, %v3514_v35  ;;  %v1431_v32 = vld [vmem:[%s4183_s23] sm:$0x3] }
 0x2b6   : > { %1206 = vmatprep.subr.mxu0 %v3542_v11  ;;  %1332 = vmatprep.subr.mxu1 %v1323_v23  ;;  %v1316_v11 = vmul.f32 %v3500_v17, %v3500_v17 }
 0x2b7   : > { %1207 = vmatpush1.msra.mxu0 %v3528_v57  ;;  %1333 = vmatpush1.msra.mxu1 %v1322_v24  ;;  %v1315_v57 = vmul.f32 %v3488_v0, %v3488_v0 }
 0x2b8   : > { %1208 = vmatprep.subr.mxu0 %v3516_v36  ;;  %1334 = vmatprep.subr.mxu1 %v1321_v40  ;;  %v1314_v36 = vmul.f32 %v3474_v50, %v3474_v50 }
 0x2b9   : > { %1209 = vmatpush1.msra.mxu0 %v3502_v20  ;;  %1335 = vmatpush1.msra.mxu1 %v1320_v46  ;;  %v1313_v20 = vmul.f32 %v3486_v63, %v3486_v63 }
 0x2ba   : > { %1210 = vmatprep.subr.mxu0 %v3514_v35  ;;  %1336 = vmatprep.subr.mxu1 %v1319_v39  ;;  %v1312_v35 = vmul.f32 %v3472_v49, %v3472_v49 }
 0x2bb   : > { %1211 = vmatpush1.msra.mxu0 %v3500_v17  ;;  %1337 = vmatpush1.msra.mxu1 %v1318_v12  ;;  %v1311_v17 = vmul.f32 %v3563_v45, %v3563_v45 }
 0x2bc   : > { %1212 = vmatprep.subr.mxu0 %v3488_v0  ;;  %1338 = vmatprep.subr.mxu1 %v1317_v58  ;;  %v1310_v0 = vmul.f32 %v3554_v38, %v3554_v38 }
 0x2bd   : > { %1213 = vmatpush1.msra.mxu0 %v3474_v50  ;;  %1339 = vmatpush1.msra.mxu1 %v1316_v11  ;;  %v1309_v50 = vmul.f32 %v3561_v44, %v3561_v44 }
 0x2be   : > { %1214 = vmatprep.subr.mxu0 %v3486_v63  ;;  %1340 = vmatprep.subr.mxu1 %v1315_v57  ;;  %v1308_v63 = vmul.f32 %v3552_v37, %v3552_v37 }
 0x2bf   : > { %1215 = vmatpush1.msra.mxu0 %v3472_v49  ;;  %1341 = vmatpush1.msra.mxu1 %v1314_v36  ;;  %v1307_v49 = vmul.f32 %v3539_v10, %v3539_v10 }
 0x2c0   : > { %1216 = vmatprep.subr.mxu0 %v3563_v45  ;;  %1342 = vmatprep.subr.mxu1 %v1313_v20  ;;  %v1306_v45 = vmul.f32 %v3526_v56, %v3526_v56 }
 0x2c1   : > { %1217 = vmatpush1.msra.mxu0 %v3554_v38  ;;  %1343 = vmatpush1.msra.mxu1 %v1312_v35  ;;  %v1305_v38 = vmul.f32 %v3537_v9, %v3537_v9 }
 0x2c2   : > { %1218 = vmatprep.subr.mxu0 %v3561_v44  ;;  %1344 = vmatprep.subr.mxu1 %v1311_v17  ;;  %v1304_v44 = vmul.f32 %v3524_v55, %v3524_v55 }
 0x2c3   : > { %1219 = vmatpush1.msra.mxu0 %v3552_v37  ;;  %1345 = vmatpush1.msra.mxu1 %v1310_v0  ;;  %v1303_v37 = vmul.f32 %v3511_v34, %v3511_v34 }
 0x2c4   : > { %1220 = vmatprep.subr.mxu0 %v3539_v10  ;;  %1346 = vmatprep.subr.mxu1 %v1309_v50  ;;  %v1194_v10 = vstv %s2471_s1 }
 0x2c5   : > { %1221 = vmatpush1.msra.mxu0 %v3526_v56  ;;  %1347 = vmatpush1.msra.mxu1 %v1308_v63  ;;  %v1302_v56 = vmul.f32 %v3498_v16, %v3498_v16  ;;  %v1195_v43 = vadd.s32 %v1194_v10, %v1192_v41 }
 0x2c6   : > { %1222 = vmatprep.subr.mxu0 %v3537_v9  ;;  %1348 = vmatprep.subr.mxu1 %v1307_v49  ;;  %v1300_v9 = vmul.f32 %v3496_v15, %v3496_v15 }
 0x2c7   : > { %1223 = vmatpush1.msra.mxu0 %v3524_v55  ;;  %1349 = vmatpush1.msra.mxu1 %v1306_v45  ;;  %v1299_v55 = vmul.f32 %v3483_v62, %v3483_v62  ;;  %vm1196_vm2 = vcmp.lt.s32.totalorder %v1195_v43, 272 }
 0x2c8   : > { %1224 = vmatprep.subr.mxu0 %v3511_v34  ;;  %1350 = vmatprep.subr.mxu1 %v1305_v38  ;;  %v3159_v34 = vmov 1.0  }
 0x2c9   : > { %1225 = vmatpush1.msra.mxu0 %v3498_v16  ;;  %1351 = vmatpush1.msra.mxu1 %v1304_v44  ;;  %v1298_v16 = vmul.f32 %v3470_v48, %v3470_v48 }
 0x2ca   : > { %1226 = vmatprep.subr.mxu0 %v3509_v33  ;;  %1352 = vmatprep.subr.mxu1 %v1303_v37  ;;  %v1297_v33 = vmul.f32 %v3481_v61, %v3481_v61 }
 0x2cb   : > { %1227 = vmatpush1.msra.mxu0 %v3496_v15  ;;  %1353 = vmatpush1.msra.mxu1 %v1302_v56  ;;  %v1296_v15 = vmul.f32 %v3468_v47, %v3468_v47 }
 0x2cc   : > { %1228 = vmatprep.subr.mxu0 %v3483_v62  ;;  %1354 = vmatprep.subr.mxu1 %v1301_v42  ;;  %v3158_v62 = vmov 0.0  }
 0x2cd   : > { %1229 = vmatpush1.msra.mxu0 %v3470_v48  ;;  %1355 = vmatpush1.msra.mxu1 %v1300_v9  ;;  %v3160_v48 = vmov 1966171168  }
 0x2ce   : > { %1230 = vmatprep.subr.mxu0 %v3481_v61  ;;  %1356 = vmatprep.subr.mxu1 %v1299_v55  ;;  %v1275_v51 = vunpack.c.l.s4 %v3160_v48 }
 0x2cf   : > { %1231 = vmatpush1.msra.mxu0 %v3468_v47  ;;  %1264 = vmatprep.mubr.f32.mxu0 %v3158_v62 }
 0x2d0   : > { %1357 = vmatpush1.msra.mxu1 %v1298_v16  ;;  %2415 = vmatmul.mubr.msk.f32.vlgmr.msra.gmra.mxu0 %vm1196_vm2, %v3159_v34  ;;  %v1276_v52 = vunpack.c.0.s8 %v1275_v51 }
 0x2d1   : > { %1358 = vmatprep.subr.mxu1 %v1297_v33  ;;  %1392 = vmatprep.mubr.f32.mxu1 %v3158_v62 }
 0x2d2   : > { %1359 = vmatpush1.msra.mxu1 %v1296_v15  ;;  %v1279_v61 = vsub.s32 %v1276_v52, %v3442_v19 }
 0x2d3   : > { %2416 = vmatmul.mubr.msk.f32.vlgmr.msra.gmra.mxu1 %vm1196_vm2, %v3159_v34 }
 0x390   : > { %v1266_v53 = vpop.f32.mrf.mxu0 }
 0x392   : > { %v1268_v54 = vpop.f32.mrf.mxu0 }
 0x393   : > { %v1273_v59 = vcombine.low %v1266_v53, %v1268_v54  ;;  %v1394_v60 = vpop.f32.mrf.mxu1 }
 0x395   : > { %v1280_v1 = vrot.slane %v1273_v59, %v1279_v61  ;;  %v1396_v47 = vpop.f32.mrf.mxu1 }
 0x396   : > { %v1401_v3 = vcombine.low %v1394_v60, %v1396_v47 }
 0x397   : > { %v1287_v4 = vrot.slane %v1280_v1, %v1279_v61 }
 0x398   : > { %v1408_v6 = vrot.slane %v1401_v3, %v1279_v61 }
 0x399   : > { %v1289_v7 = vadd.f32 %v1287_v4, %v1199_v2 }
 0x39a   : > { %v1415_v13 = vrot.slane %v1408_v6, %v1279_v61 }
 0x39b   : > { %1294 = vst.msk [vmem:[#allocation3] sm:$0x3] %vm3771_vm3, %v1289_v7 }
 0x39c   : > { %v1417_v19 = vadd.f32 %v1415_v13, %v1295_v8 }
 0x39e   : > { %1418 = vst.msk [vmem:[#allocation4] sm:$0x3] %vm3771_vm3, %v1417_v19 }
 0x3a2   : > { %v1419_v14 = vld [vmem:[#allocation3] sm:$0x3] }
 0x3a3   : > { %v1420_v21 = vmul.f32 0.0036764706, %v1419_v14 }
 0x3a5   : > { %v1423_v22 = vmul.f32 %v1420_v21, %v1420_v21  ;;  %v1421_v25 = vld [vmem:[#allocation4] sm:$0x3] }
 0x3a6   : > { %v1422_v26 = vmul.f32 0.0036764706, %v1421_v25 }
 0x3a8   : > { %v1424_v18 = vsub.f32 %v1422_v26, %v1423_v22 }
 0x3aa   : > { %v1425_v27 = vmax.f32 %v1424_v18, 0.0 }
 0x3ac   : > { %v1427_v28 = vadd.f32 1e-05, %v1425_v27 }
 0x3ae   : > { %2820 = vrsqrt.f32 %v1427_v28 }
 0x3bb   : > { %v2821_v30 = vpop.eup %2820 }
 0x3bc   : > { %v1429_v31 = vmul.f32 %v2821_v30, %v1426_v29 }
 0x3be   : > { %1430 = vst.msk [vmem:[#allocation5] sm:$0x3] %vm3771_vm3, %v1429_v31  ;;  %v1432_v23 = vmul.f32 %v1429_v31, %v1420_v21 }
 0x3c0   : > { %v1433_v24 = vsub.f32 %v1431_v32, %v1432_v23 }
 0x3c2   : > { %1434 = vst.msk [vmem:[#allocation6] sm:$0x3] %vm3771_vm3, %v1433_v24 }
 0x3c3 PF: > { %s4184_s26 = sld [smem:[#allocation25_spill]] }
 0x3c9   : > { %p2417_p7 = scmp.ne.s32.totalorder %s4184_s26, 1 }
 0x3ca   : > { %s4185_s16 = sld [smem:[#allocation24_spill]] (!%p2417_p7) }
 0x3cb   : > { %1438 = sbr.rel (%p2417_p7) target bundleno = 1628 (0x65c), region = 88  ;;  %s4186_s12 = sld [smem:[#allocation35_spill]] (!%p2417_p7) }
 0x3d0   : > { %v2822_v40 = vld [vmem:[#allocation12 + $0x78] sm:$0xff]   ;;  %v2824_v39 = vld [vmem:[#allocation12 + $0x70] sm:$0xff]   ;;  %v2826_v58 = vld [vmem:[#allocation12 + $0x68] sm:$0xff]   ;;  %v1492_v11 = vlaneseq  ;;  %s2472_s29 = sshll.u32 %s4185_s16, 7 }
 0x3d1   : > { %v2823_v46 = vld [vmem:[#allocation12 + $0x38] sm:$0xff]   ;;  %2475 = vmatprep.subr.bf16.mxu0 %v2822_v40  ;;  %v2825_v12 = vld [vmem:[#allocation12 + $0x30] sm:$0xff]   ;;  %v2827_v57 = vld [vmem:[#allocation12 + $0x28] sm:$0xff]   ;;  %s3791_s9 = scalar_lea.vmem [#allocation2], %s2472_s29 }
 0x3d2   : > { %2476 = vmatpush3.bf16.msra.mxu0 %v2823_v46  ;;  %v2828_v36 = vld [vmem:[#allocation12 + $0x60] sm:$0xff]   ;;  %v1493_v20 = vshrl.u32 %v1492_v11, 7  ;;  %v2830_v17 = vld [vmem:[#allocation12 + $0x58] sm:$0xff]   ;;  %v2832_v49 = vld [vmem:[#allocation12 + $0x50] sm:$0xff]  }
 0x3d3   : > { %2477 = vmatprep.subr.bf16.mxu0 %v2824_v39  ;;  %v2829_v35 = vld [vmem:[#allocation12 + $0x20] sm:$0xff]   ;;  %v2831_v50 = vld [vmem:[#allocation12 + $0x18] sm:$0xff]   ;;  %v1444_v9 = vld [vmem:[%s3791_s9 + $0x10] sm:$0xff] }
 0x3d4   : > { %v1494_v0 = vsub.s32 0, %v1493_v20  ;;  %v1498_v63 = vsub.s32 1, %v1493_v20  ;;  %v1442_v45 = vld [vmem:[%s3791_s9] sm:$0xff]  ;;  %v1443_v38 = vld [vmem:[%s3791_s9 + $0x8] sm:$0xff]  ;;  %v1445_v43 = vld [vmem:[%s3791_s9 + $0x18] sm:$0xff]  ;;  %v1463_v34 = vunpack.c.h.bf16 %v1444_v9  ;;  %v1462_v51 = vunpack.c.l.bf16 %v1444_v9 }
 0x3d5   : > { %v1490_v44 = vld [vmem:[#allocation5] sm:$0x3]  ;;  %v1458_v41 = vunpack.c.l.bf16 %v1442_v45  ;;  %v1459_v37 = vunpack.c.h.bf16 %v1442_v45  ;;  %v1460_v10 = vunpack.c.l.bf16 %v1443_v38  ;;  %v1461_v56 = vunpack.c.h.bf16 %v1443_v38  ;;  %v1534_v42 = vld [vmem:[#allocation6] sm:$0x3]  ;;  %v2833_v62 = vld [vmem:[#allocation12 + $0x10] sm:$0xff]  }
 0x3d6   : > { %2478 = vmatpush3.bf16.msra.mxu0 %v2825_v12  ;;  %v3797_v55 = vrot.slane %v1490_v44, %v1494_v0  ;;  %v3799_v16 = vrot.slane %v1490_v44, %v1498_v63  ;;  %v3801_v33 = vrot.slane %v1534_v42, %v1494_v0  ;;  %v3803_v15 = vrot.slane %v1534_v42, %v1498_v63  ;;  %v2834_v52 = vld [vmem:[#allocation12 + $0x48] sm:$0xff]   ;;  %v1446_v3 = vld [vmem:[%s3791_s9 + $0x20] sm:$0xff]  ;;  %v1447_v4 = vld [vmem:[%s3791_s9 + $0x28] sm:$0xff] }
 0x3d7   : > { %2479 = vmatprep.subr.bf16.mxu0 %v2826_v58  ;;  %v1465_v48 = vunpack.c.h.bf16 %v1445_v43  ;;  %v2835_v60 = vld [vmem:[#allocation12 + $0x8] sm:$0xff]   ;;  %v1464_v2 = vunpack.c.l.bf16 %v1445_v43  ;;  %v2836_v14 = vld [vmem:[#allocation12 + $0x40] sm:$0xff]   ;;  %v1467_v23 = vunpack.c.h.bf16 %v1446_v3  ;;  %v1469_v24 = vunpack.c.h.bf16 %v1447_v4  ;;  %v1449_v39 = vld [vmem:[%s3791_s9 + $0x38] sm:$0xff] }
 0x3d8   : > { %v1503_v53 = vmul.f32 %v3799_v16, %v1459_v37  ;;  %v1505_v61 = vmul.f32 %v3799_v16, %v1461_v56  ;;  %v1502_v54 = vmul.f32 %v3797_v55, %v1458_v41  ;;  %v1504_v59 = vmul.f32 %v3797_v55, %v1460_v10  ;;  %v2837_v26 = vld [vmem:[#allocation12] sm:$0xff]   ;;  %v1448_v30 = vld [vmem:[%s3791_s9 + $0x30] sm:$0xff]  ;;  %v1450_v56 = vld [vmem:[%s3791_s9 + $0x40] sm:$0xff] }
 0x3d9   : > { %v1507_v1 = vmul.f32 %v3799_v16, %v1463_v34  ;;  %v1509_v47 = vmul.f32 %v3799_v16, %v1465_v48  ;;  %v1506_v25 = vmul.f32 %v3797_v55, %v1462_v51  ;;  %v1508_v32 = vmul.f32 %v3797_v55, %v1464_v2  ;;  %v1451_v42 = vld [vmem:[%s3791_s9 + $0x48] sm:$0xff] }
 0x3da   : > { %2480 = vmatpush3.bf16.msra.mxu0 %v2827_v57  ;;  %v1547_v5 = vadd.f32 %v3803_v15, %v1503_v53  ;;  %v1549_v6 = vadd.f32 %v3803_v15, %v1505_v61  ;;  %v1546_v7 = vadd.f32 %v3801_v33, %v1502_v54  ;;  %v1548_v8 = vadd.f32 %v3801_v33, %v1504_v59 }
 0x3db   : > { %2481 = vmatprep.subr.bf16.mxu0 %v2828_v36  ;;  %v1551_v13 = vadd.f32 %v3803_v15, %v1507_v1  ;;  %v1553_v19 = vadd.f32 %v3803_v15, %v1509_v47  ;;  %v1511_v40 = vmul.f32 %v3799_v16, %v1467_v23  ;;  %v1513_v46 = vmul.f32 %v3799_v16, %v1469_v24 }
 0x3dc   : > { %v1579_v21 = vmax.f32 %v1547_v5, 0.0  ;;  %v1581_v22 = vmax.f32 %v1549_v6, 0.0  ;;  %v1578_v18 = vmax.f32 %v1546_v7, 0.0  ;;  %v1580_v27 = vmax.f32 %v1548_v8, 0.0  ;;  %v1452_v6 = vld [vmem:[%s3791_s9 + $0x50] sm:$0xff]  ;;  %v1453_v7 = vld [vmem:[%s3791_s9 + $0x58] sm:$0xff] }
 0x3dd   : > { %v1583_v28 = vmax.f32 %v1551_v13, 0.0  ;;  %v1585_v29 = vmax.f32 %v1553_v19, 0.0  ;;  %v1466_v12 = vunpack.c.l.bf16 %v1446_v3  ;;  %v1468_v58 = vunpack.c.l.bf16 %v1447_v4 }
 0x3de   : > { %2482 = vmatpush3.bf16.msra.mxu0 %v2829_v35  ;;  %v1611_v31 = vpack.c.bf16 %v1581_v22, %v1579_v21  ;;  %v1610_v11 = vpack.c.bf16 %v1580_v27, %v1578_v18  ;;  %v1550_v57 = vadd.f32 %v3801_v33, %v1506_v25  ;;  %v1552_v36 = vadd.f32 %v3801_v33, %v1508_v32 }
 0x3df   : > { %2483 = vmatprep.subr.bf16.mxu0 %v2830_v17  ;;  %v1471_v20 = vunpack.c.h.bf16 %v1448_v30  ;;  %v1613_v35 = vpack.c.bf16 %v1585_v29, %v1583_v28  ;;  %v1555_v17 = vadd.f32 %v3803_v15, %v1511_v40  ;;  %v1557_v0 = vadd.f32 %v3803_v15, %v1513_v46  ;;  %v1454_v46 = vld [vmem:[%s3791_s9 + $0x60] sm:$0xff] }
 0x3e0   : > { %1793 = vmatprep.mubr.bf16.mxu0 %v1611_v31  ;;  %v1510_v63 = vmul.f32 %v3797_v55, %v1466_v12  ;;  %v1582_v45 = vmax.f32 %v1550_v57, 0.0  ;;  %v1584_v38 = vmax.f32 %v1552_v36, 0.0  ;;  %v1472_v34 = vunpack.c.l.bf16 %v1449_v39 }
 0x3e1   : > { %v1515_v44 = vmul.f32 %v3799_v16, %v1471_v20  ;;  %v1587_v41 = vmax.f32 %v1555_v17, 0.0  ;;  %v1589_v37 = vmax.f32 %v1557_v0, 0.0  ;;  %v1475_v61 = vunpack.c.h.bf16 %v1450_v56 }
 0x3e2   : > { %2484 = vmatpush3.bf16.msra.mxu0 %v2831_v50  ;;  %v1473_v50 = vunpack.c.h.bf16 %v1449_v39  ;;  %v1554_v9 = vadd.f32 %v3801_v33, %v1510_v63  ;;  %v1612_v48 = vpack.c.bf16 %v1584_v38, %v1582_v45  ;;  %v1477_v54 = vunpack.c.h.bf16 %v1451_v42  ;;  %v1455_v39 = vld [vmem:[%s3791_s9 + $0x68] sm:$0xff] }
 0x3e3   : > { %2485 = vmatprep.subr.bf16.mxu0 %v2832_v49  ;;  %v1512_v49 = vmul.f32 %v3797_v55, %v1468_v58  ;;  %v1559_v51 = vadd.f32 %v3803_v15, %v1515_v44  ;;  %v1516_v47 = vmul.f32 %v3797_v55, %v1472_v34  ;;  %v1519_v4 = vmul.f32 %v3799_v16, %v1475_v61 }
 0x3e4   : > { %v1517_v10 = vmul.f32 %v3799_v16, %v1473_v50  ;;  %v1586_v59 = vmax.f32 %v1554_v9, 0.0  ;;  %v1521_v5 = vmul.f32 %v3799_v16, %v1477_v54  ;;  %v1476_v21 = vunpack.c.l.bf16 %v1451_v42  ;;  %v1457_v42 = vld [vmem:[%s3791_s9 + $0x78] sm:$0xff] }
 0x3e5   : > { %v1556_v43 = vadd.f32 %v3801_v33, %v1512_v49  ;;  %v1591_v2 = vmax.f32 %v1559_v51, 0.0  ;;  %v1560_v19 = vadd.f32 %v3801_v33, %v1516_v47  ;;  %v1479_v22 = vunpack.c.h.bf16 %v1452_v6 }
 0x3e6   : > { %2486 = vmatpush3.bf16.msra.mxu0 %v2833_v62  ;;  %v1470_v62 = vunpack.c.l.bf16 %v1448_v30  ;;  %v1561_v53 = vadd.f32 %v3803_v15, %v1517_v10  ;;  %v1481_v25 = vunpack.c.h.bf16 %v1453_v7  ;;  %v1563_v18 = vadd.f32 %v3803_v15, %v1519_v4 }
 0x3e7   : > { %2487 = vmatprep.subr.bf16.mxu0 %v2834_v52  ;;  %v1615_v52 = vpack.c.bf16 %v1589_v37, %v1587_v41  ;;  %v1565_v27 = vadd.f32 %v3803_v15, %v1521_v5  ;;  %v1592_v29 = vmax.f32 %v1560_v19, 0.0  ;;  %v1520_v31 = vmul.f32 %v3797_v55, %v1476_v21 }
 0x3e8   : > { %v1514_v1 = vmul.f32 %v3797_v55, %v1470_v62  ;;  %v1593_v3 = vmax.f32 %v1561_v53, 0.0  ;;  %v1523_v32 = vmul.f32 %v3799_v16, %v1479_v22  ;;  %v1525_v23 = vmul.f32 %v3799_v16, %v1481_v25 }
 0x3e9   : > { %v1595_v24 = vmax.f32 %v1563_v18, 0.0  ;;  %v1597_v40 = vmax.f32 %v1565_v27, 0.0  ;;  %v1478_v58 = vunpack.c.l.bf16 %v1452_v6  ;;  %v1564_v36 = vadd.f32 %v3801_v33, %v1520_v31 }
 0x3ea   : > { %2488 = vmatpush3.bf16.msra.mxu0 %v2835_v60  ;;  %v1588_v60 = vmax.f32 %v1556_v43, 0.0  ;;  %v1558_v13 = vadd.f32 %v3801_v33, %v1514_v1  ;;  %v1567_v20 = vadd.f32 %v3803_v15, %v1523_v32  ;;  %v1483_v0 = vunpack.c.h.bf16 %v1454_v46 }
 0x3eb   : > { %2489 = vmatprep.subr.bf16.mxu0 %v2836_v14  ;;  %v1474_v14 = vunpack.c.l.bf16 %v1450_v56  ;;  %v1619_v17 = vpack.c.bf16 %v1597_v40, %v1595_v24  ;;  %v1485_v50 = vunpack.c.h.bf16 %v1455_v39  ;;  %v1522_v63 = vmul.f32 %v3797_v55, %v1478_v58  ;;  %v1456_v56 = vld [vmem:[%s3791_s9 + $0x70] sm:$0xff] }
 0x3ec   : > { %v1614_v8 = vpack.c.bf16 %v1588_v60, %v1586_v59  ;;  %v1590_v28 = vmax.f32 %v1558_v13, 0.0  ;;  %v1596_v38 = vmax.f32 %v1564_v36, 0.0  ;;  %v1599_v44 = vmax.f32 %v1567_v20, 0.0 }
 0x3ed   : > { %v1518_v30 = vmul.f32 %v3797_v55, %v1474_v14  ;;  %v1527_v37 = vmul.f32 %v3799_v16, %v1483_v0  ;;  %v1529_v10 = vmul.f32 %v3799_v16, %v1485_v50  ;;  %v1566_v9 = vadd.f32 %v3801_v33, %v1522_v63 }
 0x3ee   : > { %2490 = vmatpush3.bf16.msra.mxu0 %v2837_v26  ;;  %v1617_v26 = vpack.c.bf16 %v1593_v3, %v1591_v2  ;;  %v1616_v12 = vpack.c.bf16 %v1592_v29, %v1590_v28  ;;  %v1484_v51 = vunpack.c.l.bf16 %v1455_v39  ;;  %v1487_v61 = vunpack.c.h.bf16 %v1456_v56 }
 0x3ef   : > { %v1562_v57 = vadd.f32 %v3801_v33, %v1518_v30  ;;  %v1573_v53 = vadd.f32 %v3803_v15, %v1529_v10  ;;  %v1489_v54 = vunpack.c.h.bf16 %v1457_v42  ;;  %v1598_v59 = vmax.f32 %v1566_v9, 0.0 }
 0x3f0   : > { %v1528_v47 = vmul.f32 %v3797_v55, %v1484_v51  ;;  %v1531_v4 = vmul.f32 %v3799_v16, %v1487_v61  ;;  %v1486_v13 = vunpack.c.l.bf16 %v1456_v56  ;;  %v1488_v19 = vunpack.c.l.bf16 %v1457_v42  ;;  %v2840_v61 = vld [vmem:[#allocation13 + $0x28] sm:$0xff]  }
 0x3f1   : > { %1794 = vmatmul.mubr.bf16.vlgmr.msra.gmra.mxu0 %v1610_v11  ;;  %v1480_v11 = vunpack.c.l.bf16 %v1453_v7  ;;  %v1594_v45 = vmax.f32 %v1562_v57, 0.0  ;;  %v1605_v3 = vmax.f32 %v1573_v53, 0.0  ;;  %v1533_v5 = vmul.f32 %v3799_v16, %v1489_v54 }
 0x3f2   : > { %1801 = vmatprep.mubr.bf16.mxu0 %v1613_v35  ;;  %v1569_v35 = vadd.f32 %v3803_v15, %v1525_v23  ;;  %v1575_v21 = vadd.f32 %v3803_v15, %v1531_v4  ;;  %v1530_v18 = vmul.f32 %v3797_v55, %v1486_v13  ;;  %v1532_v27 = vmul.f32 %v3797_v55, %v1488_v19 }
 0x3f3   : > { %v1524_v49 = vmul.f32 %v3797_v55, %v1480_v11  ;;  %v1618_v62 = vpack.c.bf16 %v1596_v38, %v1594_v45  ;;  %v1577_v22 = vadd.f32 %v3803_v15, %v1533_v5 }
 0x3f4   : > { %v1601_v41 = vmax.f32 %v1569_v35, 0.0  ;;  %v1607_v16 = vmax.f32 %v1575_v21, 0.0  ;;  %v1574_v30 = vadd.f32 %v3801_v33, %v1530_v18  ;;  %v1576_v31 = vadd.f32 %v3801_v33, %v1532_v27 }
 0x3f5   : > { %v1568_v43 = vadd.f32 %v3801_v33, %v1524_v49  ;;  %v1609_v28 = vmax.f32 %v1577_v22, 0.0 }
 0x3f6   : > { %v1621_v34 = vpack.c.bf16 %v1601_v41, %v1599_v44  ;;  %v1606_v23 = vmax.f32 %v1574_v30, 0.0  ;;  %v1608_v24 = vmax.f32 %v1576_v31, 0.0 }
 0x3f7   : > { %v1600_v60 = vmax.f32 %v1568_v43, 0.0  ;;  %v1625_v32 = vpack.c.bf16 %v1609_v28, %v1607_v16 }
 0x3f9   : > { %1802 = vmatmul.mubr.bf16.gmra.mxu0 %v1612_v48  ;;  %v1482_v48 = vunpack.c.l.bf16 %v1454_v46  ;;  %v1620_v6 = vpack.c.bf16 %v1600_v60, %v1598_v59 }
 0x3fa   : > { %1809 = vmatprep.mubr.bf16.mxu0 %v1615_v52  ;;  %v1571_v52 = vadd.f32 %v3803_v15, %v1527_v37  ;;  %v1624_v15 = vpack.c.bf16 %v1608_v24, %v1606_v23  ;;  %v2838_v37 = vld [vmem:[#allocation13 + $0x38] sm:$0xff]  }
 0x3fb   : > { %v1526_v1 = vmul.f32 %v3797_v55, %v1482_v48  ;;  %v3884_v55 = vld [vmem:[%s4186_s12] ss:$0 sm:$0xff]  ;;  %2555 = vmatprep.subr.bf16.mxu1 %v2838_v37 }
 0x3fc   : > { %v1603_v2 = vmax.f32 %v1571_v52, 0.0  ;;  %2556 = vmatpush3.bf16.msra.mxu1 %v2838_v37 }
 0x3fd   : > { %v1570_v7 = vadd.f32 %v3801_v33, %v1526_v1 }
 0x3fe   : > { %v1623_v14 = vpack.c.bf16 %v1605_v3, %v1603_v2  ;;  %v2841_v2 = vld [vmem:[#allocation13 + $0x20] sm:$0xff]  }
 0x3ff   : > { %v1602_v25 = vmax.f32 %v1570_v7, 0.0 }
 0x401   : > { %1810 = vmatmul.mubr.bf16.gmra.mxu0 %v1614_v8  ;;  %v1572_v8 = vadd.f32 %v3801_v33, %v1528_v47 }
 0x402   : > { %1817 = vmatprep.mubr.bf16.mxu0 %v1617_v26 }
 0x403   : > { %v1604_v26 = vmax.f32 %v1572_v8, 0.0  ;;  %v2842_v8 = vld [vmem:[#allocation13 + $0x18] sm:$0xff]  }
 0x405   : > { %v1622_v29 = vpack.c.bf16 %v1604_v26, %v1602_v25  ;;  %v2843_v25 = vld [vmem:[#allocation13 + $0x10] sm:$0xff]  }
 0x409   : > { %1818 = vmatmul.mubr.bf16.gmra.mxu0 %v1616_v12 }
 0x40a   : > { %1825 = vmatprep.mubr.bf16.mxu0 %v1619_v17 }
 0x411   : > { %1826 = vmatmul.mubr.bf16.gmra.mxu0 %v1618_v62  ;;  %v2839_v62 = vld [vmem:[#allocation13 + $0x30] sm:$0xff]  }
 0x412   : > { %1833 = vmatprep.mubr.bf16.mxu0 %v1621_v34  ;;  %2557 = vmatprep.subr.bf16.mxu1 %v2839_v62 }
 0x413   : > { %2558 = vmatpush3.bf16.msra.mxu1 %v2839_v62 }
 0x414   : > { %2559 = vmatprep.subr.bf16.mxu1 %v2840_v61 }
 0x417   : > { %2560 = vmatpush3.bf16.msra.mxu1 %v2840_v61 }
 0x418   : > { %2561 = vmatprep.subr.bf16.mxu1 %v2841_v2 }
 0x419   : > { %1834 = vmatmul.mubr.bf16.gmra.mxu0 %v1620_v6 }
 0x41a   : > { %1841 = vmatprep.mubr.bf16.mxu0 %v1623_v14 }
 0x41b   : > { %2562 = vmatpush3.bf16.msra.mxu1 %v2841_v2 }
 0x41c   : > { %2563 = vmatprep.subr.bf16.mxu1 %v2842_v8 }
 0x41f   : > { %2564 = vmatpush3.bf16.msra.mxu1 %v2842_v8 }
 0x420   : > { %2565 = vmatprep.subr.bf16.mxu1 %v2843_v25 }
 0x421   : > { %1842 = vmatmul.mubr.bf16.gmra.mxu0 %v1622_v29  ;;  %v2844_v29 = vld [vmem:[#allocation13 + $0x8] sm:$0xff]  }
 0x422   : > { %1849 = vmatprep.mubr.bf16.mxu0 %v1625_v32 }
 0x423   : > { %2566 = vmatpush3.bf16.msra.mxu1 %v2843_v25 }
 0x424   : > { %2567 = vmatprep.subr.bf16.mxu1 %v2844_v29 }
 0x427   : > { %2568 = vmatpush3.bf16.msra.mxu1 %v2844_v29 }
 0x429   : > { %1850 = vmatmul.mubr.bf16.gmra.mxu0 %v1624_v15  ;;  %v2845_v15 = vld [vmem:[#allocation13] sm:$0xff]  }
 0x42a   : > { %2569 = vmatprep.subr.bf16.mxu1 %v2845_v15 }
 0x42b   : > { %2570 = vmatpush3.bf16.msra.mxu1 %v2845_v15 }
 0x4b1   : > { %v2491_v40 = vpop.f32.mrf.mxu0 }
 0x4b3   : > { %v2492_v46 = vpop.f32.mrf.mxu0 }
 0x4b4   : > { %v2493_v39 = vadd.f32 %v2492_v46, %v2491_v40 }
 0x4b5   : > { %v2494_v12 = vpop.f32.mrf.mxu0 }
 0x4b6   : > { %v3887_v58 = vadd.f32 %v2493_v39, %v3884_v55 }
 0x4b7   : > { %v2495_v33 = vpop.f32.mrf.mxu0 }
 0x4b8   : > { %v2496_v11 = vadd.f32 %v2495_v33, %v2494_v12  ;;  %v1858_v57 = vmul.f32 %v3887_v58, %v3887_v58 }
 0x4b9   : > { %v2497_v36 = vpop.f32.mrf.mxu0 }
 0x4ba   : > { %v3892_v20 = vadd.f32 %v2496_v11, %v3884_v55  ;;  %1874 = vadd.xlane.f32.xlu0 %v1858_v57 }
 0x4bb   : > { %v2498_v35 = vpop.f32.mrf.mxu0 }
 0x4bc   : > { %v2499_v17 = vadd.f32 %v2498_v35, %v2497_v36  ;;  %v1859_v0 = vmul.f32 %v3892_v20, %v3892_v20 }
 0x4bd   : > { %v2500_v50 = vpop.f32.mrf.mxu0 }
 0x4be   : > { %1876 = vadd.xlane.f32.xlu0 %v1859_v0  ;;  %v3897_v63 = vadd.f32 %v2499_v17, %v3884_v55 }
 0x4bf   : > { %v2501_v49 = vpop.f32.mrf.mxu0 }
 0x4c0   : > { %v2502_v45 = vadd.f32 %v2501_v49, %v2500_v50  ;;  %v1860_v38 = vmul.f32 %v3897_v63, %v3897_v63 }
 0x4c1   : > { %v2503_v44 = vpop.f32.mrf.mxu0 }
 0x4c2   : > { %v3902_v41 = vadd.f32 %v2502_v45, %v3884_v55  ;;  %1878 = vadd.xlane.f32.xlu1 %v1860_v38 }
 0x4c3   : > { %v2504_v10 = vpop.f32.mrf.mxu0 }
 0x4c4   : > { %v2505_v56 = vadd.f32 %v2504_v10, %v2503_v44  ;;  %v1861_v42 = vmul.f32 %v3902_v41, %v3902_v41 }
 0x4c5   : > { %v2506_v9 = vpop.f32.mrf.mxu0 }
 0x4c6   : > { %v3907_v43 = vadd.f32 %v2505_v56, %v3884_v55  ;;  %1880 = vadd.xlane.f32.xlu1 %v1861_v42 }
 0x4c7   : > { %v2507_v34 = vpop.f32.mrf.mxu0 }
 0x4c8   : > { %v2508_v48 = vadd.f32 %v2507_v34, %v2506_v9  ;;  %v1862_v51 = vmul.f32 %v3907_v43, %v3907_v43 }
 0x4c9   : > { %v2509_v52 = vpop.f32.mrf.mxu0 }
 0x4ca   : > { %v3912_v53 = vadd.f32 %v2508_v48, %v3884_v55  ;;  %1882 = vadd.xlane.f32.xlu0 %v1862_v51 }
 0x4cb   : > { %v2510_v54 = vpop.f32.mrf.mxu0 }
 0x4cc   : > { %v2511_v59 = vadd.f32 %v2510_v54, %v2509_v52  ;;  %v1863_v60 = vmul.f32 %v3912_v53, %v3912_v53 }
 0x4cd   : > { %v2512_v1 = vpop.f32.mrf.mxu0 }
 0x4ce   : > { %v3917_v47 = vadd.f32 %v2511_v59, %v3884_v55  ;;  %1884 = vadd.xlane.f32.xlu1 %v1863_v60 }
 0x4cf   : > { %v2513_v3 = vpop.f32.mrf.mxu0 }
 0x4d0   : > { %v2514_v4 = vadd.f32 %v2513_v3, %v2512_v1  ;;  %v1864_v5 = vmul.f32 %v3917_v47, %v3917_v47 }
 0x4d1   : > { %v2515_v6 = vpop.f32.mrf.mxu0 }
 0x4d2   : > { %v3922_v7 = vadd.f32 %v2514_v4, %v3884_v55  ;;  %1886 = vadd.xlane.f32.xlu0 %v1864_v5 }
 0x4d3   : > { %v2516_v13 = vpop.f32.mrf.mxu0 }
 0x4d4   : > { %v2517_v19 = vadd.f32 %v2516_v13, %v2515_v6  ;;  %v1865_v14 = vmul.f32 %v3922_v7, %v3922_v7 }
 0x4d5   : > { %v2518_v21 = vpop.f32.mrf.mxu0 }
 0x4d6   : > { %v3927_v22 = vadd.f32 %v2517_v19, %v3884_v55  ;;  %1888 = vadd.xlane.f32.xlu1 %v1865_v14 }
 0x4d7   : > { %v2519_v26 = vpop.f32.mrf.mxu0 }
 0x4d8   : > { %v2520_v18 = vadd.f32 %v2519_v26, %v2518_v21  ;;  %v1866_v27 = vmul.f32 %v3927_v22, %v3927_v22 }
 0x4d9   : > { %v2521_v16 = vpop.f32.mrf.mxu0 }
 0x4da   : > { %v3932_v28 = vadd.f32 %v2520_v18, %v3884_v55  ;;  %1890 = vadd.xlane.f32.xlu0 %v1866_v27 }
 0x4db   : > { %v2522_v30 = vpop.f32.mrf.mxu0 }
 0x4dc   : > { %v2523_v31 = vadd.f32 %v2522_v30, %v2521_v16  ;;  %v1867_v32 = vmul.f32 %v3932_v28, %v3932_v28 }
 0x4dd   : > { %v2524_v23 = vpop.f32.mrf.mxu0 }
 0x4de   : > { %v3937_v24 = vadd.f32 %v2523_v31, %v3884_v55  ;;  %1892 = vadd.xlane.f32.xlu1 %v1867_v32 }
 0x4df   : > { %v2525_v40 = vpop.f32.mrf.mxu0 }
 0x4e0   : > { %v2526_v46 = vadd.f32 %v2525_v40, %v2524_v23  ;;  %v1868_v39 = vmul.f32 %v3937_v24, %v3937_v24 }
 0x4e1   : > { %v2527_v12 = vpop.f32.mrf.mxu0 }
 0x4e2   : > { %v3942_v33 = vadd.f32 %v2526_v46, %v3884_v55  ;;  %1894 = vadd.xlane.f32.xlu0 %v1868_v39 }
 0x4e3   : > { %v2528_v11 = vpop.f32.mrf.mxu0 }
 0x4e4   : > { %v2529_v57 = vadd.f32 %v2528_v11, %v2527_v12  ;;  %v1869_v36 = vmul.f32 %v3942_v33, %v3942_v33 }
 0x4e5   : > { %v2530_v35 = vpop.f32.mrf.mxu0 }
 0x4e6   : > { %v3947_v17 = vadd.f32 %v2529_v57, %v3884_v55  ;;  %1896 = vadd.xlane.f32.xlu1 %v1869_v36 }
 0x4e7   : > { %v2531_v0 = vpop.f32.mrf.mxu0 }
 0x4e8   : > { %v2532_v50 = vadd.f32 %v2531_v0, %v2530_v35  ;;  %v1870_v49 = vmul.f32 %v3947_v17, %v3947_v17 }
 0x4e9   : > { %v2533_v45 = vpop.f32.mrf.mxu0 }
 0x4ea   : > { %v3952_v38 = vadd.f32 %v2532_v50, %v3884_v55  ;;  %1898 = vadd.xlane.f32.xlu0 %v1870_v49 }
 0x4eb   : > { %v2534_v44 = vpop.f32.mrf.mxu0 }
 0x4ec   : > { %v2535_v37 = vadd.f32 %v2534_v44, %v2533_v45  ;;  %v1871_v10 = vmul.f32 %v3952_v38, %v3952_v38 }
 0x4ed   : > { %v2536_v56 = vpop.f32.mrf.mxu0 }
 0x4ee   : > { %v3957_v42 = vadd.f32 %v2535_v37, %v3884_v55  ;;  %1900 = vadd.xlane.f32.xlu1 %v1871_v10 }
 0x4ef   : > { %v2537_v9 = vpop.f32.mrf.mxu0 }
 0x4f0   : > { %v2538_v62 = vadd.f32 %v2537_v9, %v2536_v56  ;;  %v1872_v34 = vmul.f32 %v3957_v42, %v3957_v42 }
 0x4f2   : > { %v3962_v48 = vadd.f32 %v2538_v62, %v3884_v55  ;;  %1902 = vadd.xlane.f32.xlu0 %v1872_v34 }
 0x4f4   : > { %v1873_v51 = vmul.f32 %v3962_v48, %v3962_v48 }
 0x4f6   : > { %1904 = vadd.xlane.f32.xlu1 %v1873_v51 }
 0x543   : > { %v1875_v52 = vpop.xlane.xlu0 %1874 }
 0x544   : > { %v1906_v61 = vmax.f32 %v1875_v52, 1e-24 }
 0x546   : > { %2846 = vrsqrt.f32 %v1906_v61 }
 0x547   : > { %v1877_v54 = vpop.xlane.xlu0 %1876 }
 0x548   : > { %v1907_v59 = vmax.f32 %v1877_v54, 1e-24 }
 0x54a   : > { %2848 = vrsqrt.f32 %v1907_v59 }
 0x54b   : > { %v1879_v60 = vpop.xlane.xlu1 %1878 }
 0x54c   : > { %v1908_v1 = vmax.f32 %v1879_v60, 1e-24 }
 0x54e   : > { %2850 = vrsqrt.f32 %v1908_v1 }
 0x54f   : > { %v1881_v2 = vpop.xlane.xlu1 %1880 }
 0x550   : > { %v1909_v3 = vmax.f32 %v1881_v2, 1e-24 }
 0x552   : > { %2852 = vrsqrt.f32 %v1909_v3 }
 0x553   : > { %v2847_v55 = vpop.eup %2846  ;;  %v1883_v4 = vpop.xlane.xlu0 %1882 }
 0x554   : > { %v1910_v5 = vmax.f32 %v1883_v4, 1e-24  ;;  %v1938_v6 = vmul.f32 %v2847_v55, %v3887_v58 }
 0x556   : > { %2854 = vrsqrt.f32 %v1910_v5  ;;  %1954 = vst [vmem:[%s3403_s27] sm:$0xff] %v1938_v6 }
 0x557   : > { %v2849_v8 = vpop.eup %2848  ;;  %v1885_v13 = vpop.xlane.xlu1 %1884 }
 0x558   : > { %v1911_v19 = vmax.f32 %v1885_v13, 1e-24  ;;  %v1939_v14 = vmul.f32 %v2849_v8, %v3892_v20 }
 0x55a   : > { %2856 = vrsqrt.f32 %v1911_v19  ;;  %1955 = vst [vmem:[%s3403_s27 + $0x8] sm:$0xff] %v1939_v14  ;;  %v1970_v21 = vpack.c.bf16 %v1939_v14, %v1938_v6 }
 0x55b   : > { %v2851_v25 = vpop.eup %2850  ;;  %v1887_v26 = vpop.xlane.xlu0 %1886 }
 0x55c   : > { %v1912_v18 = vmax.f32 %v1887_v26, 1e-24  ;;  %2571 = vmatprep.mubr.bf16.mxu1 %v1970_v21  ;;  %v1940_v27 = vmul.f32 %v2851_v25, %v3897_v63 }
 0x55e   : > { %2858 = vrsqrt.f32 %v1912_v18  ;;  %1956 = vst [vmem:[%s3403_s27 + $0x10] sm:$0xff] %v1940_v27 }
 0x55f   : > { %v2853_v58 = vpop.eup %2852  ;;  %v1889_v16 = vpop.xlane.xlu1 %1888 }
 0x560   : > { %v1913_v29 = vmax.f32 %v1889_v16, 1e-24  ;;  %v1941_v30 = vmul.f32 %v2853_v58, %v3902_v41 }
 0x562   : > { %2860 = vrsqrt.f32 %v1913_v29  ;;  %1957 = vst [vmem:[%s3403_s27 + $0x18] sm:$0xff] %v1941_v30  ;;  %v1971_v20 = vpack.c.bf16 %v1941_v30, %v1940_v27 }
 0x563   : > { %v2855_v31 = vpop.eup %2854  ;;  %v1891_v32 = vpop.xlane.xlu0 %1890 }
 0x564   : > { %v1914_v23 = vmax.f32 %v1891_v32, 1e-24  ;;  %2572 = vmatmul.mubr.bf16.vlgmr.msra.gmra.mxu1 %v1971_v20  ;;  %v1942_v15 = vmul.f32 %v2855_v31, %v3907_v43 }
 0x566   : > { %2862 = vrsqrt.f32 %v1914_v23  ;;  %1958 = vst [vmem:[%s3403_s27 + $0x20] sm:$0xff] %v1942_v15 }
 0x567   : > { %v2857_v63 = vpop.eup %2856  ;;  %v1893_v40 = vpop.xlane.xlu1 %1892 }
 0x568   : > { %v1915_v46 = vmax.f32 %v1893_v40, 1e-24  ;;  %v1943_v39 = vmul.f32 %v2857_v63, %v3912_v53 }
 0x56a   : > { %2864 = vrsqrt.f32 %v1915_v46  ;;  %1959 = vst [vmem:[%s3403_s27 + $0x28] sm:$0xff] %v1943_v39  ;;  %v1972_v41 = vpack.c.bf16 %v1943_v39, %v1942_v15 }
 0x56b   : > { %v2859_v12 = vpop.eup %2858  ;;  %v1895_v11 = vpop.xlane.xlu0 %1894 }
 0x56c   : > { %v1916_v57 = vmax.f32 %v1895_v11, 1e-24  ;;  %2575 = vmatprep.mubr.bf16.mxu1 %v1972_v41  ;;  %v1944_v36 = vmul.f32 %v2859_v12, %v3917_v47 }
 0x56e   : > { %2866 = vrsqrt.f32 %v1916_v57  ;;  %1960 = vst [vmem:[%s3403_s27 + $0x30] sm:$0xff] %v1944_v36 }
 0x56f   : > { %v2861_v43 = vpop.eup %2860  ;;  %v1897_v35 = vpop.xlane.xlu1 %1896 }
 0x570   : > { %v1917_v0 = vmax.f32 %v1897_v35, 1e-24  ;;  %v1945_v50 = vmul.f32 %v2861_v43, %v3922_v7 }
 0x572   : > { %2868 = vrsqrt.f32 %v1917_v0  ;;  %1961 = vst [vmem:[%s3403_s27 + $0x38] sm:$0xff] %v1945_v50  ;;  %v1973_v53 = vpack.c.bf16 %v1945_v50, %v1944_v36 }
 0x573   : > { %v2863_v49 = vpop.eup %2862  ;;  %v1899_v45 = vpop.xlane.xlu0 %1898 }
 0x574   : > { %v1918_v44 = vmax.f32 %v1899_v45, 1e-24  ;;  %2576 = vmatmul.mubr.bf16.gmra.mxu1 %v1973_v53  ;;  %v1946_v37 = vmul.f32 %v2863_v49, %v3927_v22 }
 0x576   : > { %2870 = vrsqrt.f32 %v1918_v44  ;;  %1962 = vst [vmem:[%s3403_s27 + $0x40] sm:$0xff] %v1946_v37 }
 0x577   : > { %v2865_v47 = vpop.eup %2864  ;;  %v1901_v10 = vpop.xlane.xlu1 %1900 }
 0x578   : > { %v1919_v56 = vmax.f32 %v1901_v10, 1e-24  ;;  %v1947_v9 = vmul.f32 %v2865_v47, %v3932_v28 }
 0x57a   : > { %2872 = vrsqrt.f32 %v1919_v56  ;;  %1963 = vst [vmem:[%s3403_s27 + $0x48] sm:$0xff] %v1947_v9  ;;  %v1974_v7 = vpack.c.bf16 %v1947_v9, %v1946_v37 }
 0x57b   : > { %v2867_v62 = vpop.eup %2866  ;;  %v1903_v34 = vpop.xlane.xlu0 %1902 }
 0x57c   : > { %v1920_v51 = vmax.f32 %v1903_v34, 1e-24  ;;  %2579 = vmatprep.mubr.bf16.mxu1 %v1974_v7  ;;  %v1948_v52 = vmul.f32 %v2867_v62, %v3937_v24 }
 0x57e   : > { %2874 = vrsqrt.f32 %v1920_v51  ;;  %1964 = vst [vmem:[%s3403_s27 + $0x50] sm:$0xff] %v1948_v52 }
 0x57f   : > { %v2869_v22 = vpop.eup %2868  ;;  %v1905_v61 = vpop.xlane.xlu1 %1904 }
 0x580   : > { %v1921_v54 = vmax.f32 %v1905_v61, 1e-24  ;;  %v1949_v28 = vmul.f32 %v2869_v22, %v3942_v33 }
 0x582   : > { %2876 = vrsqrt.f32 %v1921_v54  ;;  %1965 = vst [vmem:[%s3403_s27 + $0x58] sm:$0xff] %v1949_v28  ;;  %v1975_v59 = vpack.c.bf16 %v1949_v28, %v1948_v52 }
 0x583   : > { %v2871_v60 = vpop.eup %2870 }
 0x584   : > { %2580 = vmatmul.mubr.bf16.gmra.mxu1 %v1975_v59  ;;  %v1950_v1 = vmul.f32 %v2871_v60, %v3947_v17 }
 0x586   : > { %1966 = vst [vmem:[%s3403_s27 + $0x60] sm:$0xff] %v1950_v1 }
 0x587   : > { %v2873_v24 = vpop.eup %2872 }
 0x588   : > { %v1951_v2 = vmul.f32 %v2873_v24, %v3952_v38 }
 0x58a   : > { %1967 = vst [vmem:[%s3403_s27 + $0x68] sm:$0xff] %v1951_v2  ;;  %v1976_v3 = vpack.c.bf16 %v1951_v2, %v1950_v1 }
 0x58b   : > { %v2875_v55 = vpop.eup %2874 }
 0x58c   : > { %2583 = vmatprep.mubr.bf16.mxu1 %v1976_v3  ;;  %v1952_v33 = vmul.f32 %v2875_v55, %v3957_v42 }
 0x58e   : > { %1968 = vst [vmem:[%s3403_s27 + $0x70] sm:$0xff] %v1952_v33 }
 0x58f   : > { %v2877_v4 = vpop.eup %2876 }
 0x590   : > { %v1953_v17 = vmul.f32 %v2877_v4, %v3962_v48 }
 0x592   : > { %1969 = vst [vmem:[%s3403_s27 + $0x78] sm:$0xff] %v1953_v17  ;;  %v1977_v5 = vpack.c.bf16 %v1953_v17, %v1952_v33 }
 0x594   : > { %2584 = vmatmul.mubr.bf16.gmra.mxu1 %v1977_v5 }
 0x624   : > { %v2573_v38 = vpop.f32.mrf.mxu1 }
 0x625   : > { %2141 = vst [vmem:[%s3405_s24 + $0x10] sm:$0xff] %v2573_v38 }
 0x626   : > { %v2076_v6 = vpop.f32.mrf.mxu1 }
 0x627   : > { %2139 = vst [vmem:[%s3405_s24] sm:$0xff] %v2076_v6 }
 0x628   : > { %v2574_v8 = vpop.f32.mrf.mxu1 }
 0x629   : > { %2142 = vst [vmem:[%s3405_s24 + $0x18] sm:$0xff] %v2574_v8 }
 0x62a   : > { %v2079_v42 = vpop.f32.mrf.mxu1 }
 0x62b   : > { %2140 = vst [vmem:[%s3405_s24 + $0x8] sm:$0xff] %v2079_v42 }
 0x634   : > { %v2577_v13 = vpop.f32.mrf.mxu1 }
 0x635   : > { %2145 = vst [vmem:[%s3405_s24 + $0x30] sm:$0xff] %v2577_v13 }
 0x636   : > { %v2092_v48 = vpop.f32.mrf.mxu1 }
 0x637   : > { %2143 = vst [vmem:[%s3405_s24 + $0x20] sm:$0xff] %v2092_v48 }
 0x638   : > { %v2578_v19 = vpop.f32.mrf.mxu1 }
 0x639   : > { %2146 = vst [vmem:[%s3405_s24 + $0x38] sm:$0xff] %v2578_v19 }
 0x63a   : > { %v2095_v14 = vpop.f32.mrf.mxu1 }
 0x63b   : > { %2144 = vst [vmem:[%s3405_s24 + $0x28] sm:$0xff] %v2095_v14 }
 0x644   : > { %v2581_v21 = vpop.f32.mrf.mxu1 }
 0x645   : > { %2149 = vst [vmem:[%s3405_s24 + $0x50] sm:$0xff] %v2581_v21 }
 0x646   : > { %v2108_v25 = vpop.f32.mrf.mxu1 }
 0x647   : > { %2147 = vst [vmem:[%s3405_s24 + $0x40] sm:$0xff] %v2108_v25 }
 0x648   : > { %v2582_v26 = vpop.f32.mrf.mxu1 }
 0x649   : > { %2150 = vst [vmem:[%s3405_s24 + $0x58] sm:$0xff] %v2582_v26 }
 0x64a   : > { %v2111_v18 = vpop.f32.mrf.mxu1 }
 0x64b   : > { %2148 = vst [vmem:[%s3405_s24 + $0x48] sm:$0xff] %v2111_v18 }
 0x654   : > { %v2585_v27 = vpop.f32.mrf.mxu1 }
 0x655   : > { %2153 = vst [vmem:[%s3405_s24 + $0x70] sm:$0xff] %v2585_v27 }
 0x656   : > { %v2124_v58 = vpop.f32.mrf.mxu1 }
 0x657   : > { %2151 = vst [vmem:[%s3405_s24 + $0x60] sm:$0xff] %v2124_v58 }
 0x658   : > { %v2586_v16 = vpop.f32.mrf.mxu1 }
 0x659   : > { %2154 = vst [vmem:[%s3405_s24 + $0x78] sm:$0xff] %v2586_v16 }
 0x65a   : > { %v2127_v29 = vpop.f32.mrf.mxu1 }
 0x65b   : > { %2152 = vst [vmem:[%s3405_s24 + $0x68] sm:$0xff] %v2127_v29 }
 0x65c PF: > { %s4187_s30 = sld [smem:[#allocation25_spill]]  ;;  %s2175_s21 = sshll.u32 %s3403_s27, 4  ;;  %s4019_s21 = int_to_ptr.vmem [resolvable:$true] %s2175_s21 }
 0x65d   : > { %s4188_s1 = sld [smem:[#allocation24_spill]]  ;;  %s2156_s23 = scalar_lea.sflag [#allocation9], %s3400_s3 }
 0x65e   : > { %s4189_s5 = sld [smem:[#allocation28_spill]]  ;;  %s2984_s26 = scalar_lea.vmem %s4019_s21, 2048 }
 0x65f   : > { %s4190_s20 = sld [smem:[#allocation37_spill]]  ;;  %p2985_p10 = scmp.ne.s32.totalorder %s4019_s21, %s2984_s26 }
 0x660   : > { %s3161_s27 = smov [#allocation15]  }
 0x661   : > { %s2988_s16 = sshll.u32 %s3161_s27, 4  ;;  %s2989_s16 = int_to_ptr.vmem [resolvable:$false] %s2988_s16 }
 0x662   : > { %s2990_s29 = scalar_lea.vmem %s2989_s16, 4096  ;;  %p2991_p4 = scmp.lt.s32.totalorder %s4019_s21, %s2989_s16 }
 0x663   : > { %s2168_s4 = smul.u32 %s4188_s1, %s4187_s30  ;;  %p2992_p6 = scmp.lt.s32.totalorder %s2990_s29, %s2984_s26 }
 0x664   : > { %p4191_p12 = scmp.ne.s32.totalorder %s4189_s5, 0 }
 0x665   : > { %s4017_s2 = sshll.u32 %s2168_s4, 11  ;;  %p2993_p5 = por %p2992_p6, %p2991_p4 }
 0x666   : > { %s4025_s8 = scalar_lea.hbm %s4190_s20, %s4017_s2  ;;  %p2986_p2 = pnand %p2985_p10, %p4191_p12 }
 0x668   : > { %p2987_p0 = pneg %p2986_p2 }
 0x66a   : > { %p2994_p8 = pnand %p2993_p5, %p2987_p0 }
 0x66c   : > { %2997 = shalt.err (!%p2994_p8)
}
 0x66d   : > { %s2998_s9 = scalar_lea.hbm %s4025_s8, 2048  ;;  %s3002_s12 = scalar_lea.hbm %s4190_s20, 6144 }
 0x66e   : > { %p2999_p13 = scmp.ne.s32.totalorder %s4025_s8, %s2998_s9  ;;  %p3003_p9 = scmp.lt.s32.totalorder %s4025_s8, %s4190_s20 }
 0x66f   : > { %p3004_p1 = scmp.lt.s32.totalorder %s3002_s12, %s2998_s9 }
 0x670   : > { %p3000_p3 = pnand %p2999_p13, %p4191_p12 }
 0x671   : > { %p3005_p7 = por %p3004_p1, %p3003_p9 }
 0x672   : > { %p3001_p11 = pneg %p3000_p3 }
 0x674   : > { %p3006_p10 = pnand %p3005_p7, %p3001_p11 }
 0x676   : > { %3009 = shalt.err (!%p3006_p10)
}
 0x677   : > { %s3162_s4 = smov 128   ;;  %s3163_s15 = smov 8  }
 0x678   : > { %2633 = dma.vmem_to_hbm [thread:$0]  (%p4191_p12), %s4019_s21, 2048, %s4025_s8, %s2156_s23, %s3162_s4, %s3162_s4, %s3163_s15  }
 0x679   : > { %s4192_s27 = sld [smem:[#allocation38_spill]]  ;;  %s2192_s29 = sshll.u32 %s3405_s24, 4  ;;  %s4060_s29 = int_to_ptr.vmem [resolvable:$true] %s2192_s29 }
 0x67a   : > { %s2161_s9 = scalar_lea.sflag [#allocation17], %s3400_s3  ;;  %s3010_s22 = scalar_lea.vmem %s4060_s29, 2048 }
 0x67b   : > { %p3011_p2 = scmp.ne.s32.totalorder %s4060_s29, %s3010_s22  ;;  %s3164_s28 = smov [#allocation16]  }
 0x67c   : > { %s3014_s12 = sshll.u32 %s3164_s28, 4  ;;  %s3015_s12 = int_to_ptr.vmem [resolvable:$false] %s3014_s12 }
 0x67d   : > { %p3012_p0 = pnand %p3011_p2, %p4191_p12  ;;  %s3016_s21 = scalar_lea.vmem %s3015_s12, 4096 }
 0x67e   : > { %p3017_p6 = scmp.lt.s32.totalorder %s4060_s29, %s3015_s12  ;;  %p3018_p5 = scmp.lt.s32.totalorder %s3016_s21, %s3010_s22 }
 0x67f   : > { %s4057_s16 = scalar_lea.hbm %s4192_s27, %s4017_s2  ;;  %p3013_p4 = pneg %p3012_p0 }
 0x680   : > { %p3019_p8 = por %p3018_p5, %p3017_p6 }
 0x682   : > { %p3020_p13 = pnand %p3019_p8, %p3013_p4 }
 0x684   : > { %3023 = shalt.err (!%p3020_p13)
}
 0x685   : > { %s3024_s24 = scalar_lea.hbm %s4057_s16, 2048  ;;  %s3028_s8 = scalar_lea.hbm %s4192_s27, 6144 }
 0x686   : > { %p3025_p3 = scmp.ne.s32.totalorder %s4057_s16, %s3024_s24  ;;  %p3029_p1 = scmp.lt.s32.totalorder %s4057_s16, %s4192_s27 }
 0x687   : > { %p3030_p7 = scmp.lt.s32.totalorder %s3028_s8, %s3024_s24 }
 0x688   : > { %p3026_p11 = pnand %p3025_p3, %p4191_p12 }
 0x689   : > { %p3031_p10 = por %p3030_p7, %p3029_p1 }
 0x68a   : > { %p3027_p9 = pneg %p3026_p11 }
 0x68c   : > { %p3032_p2 = pnand %p3031_p10, %p3027_p9 }
 0x68e   : > { %3035 = shalt.err (!%p3032_p2)
}
 0x68f   : > { %2634 = dma.vmem_to_hbm [thread:$0]  (%p4191_p12), %s4060_s29, 2048, %s4057_s16, %s2161_s9, %s3162_s4, %s3162_s4, %s3163_s15  }
 0x690 PF: > { %s4193_s1 = sld [smem:[#allocation23_spill]]  ;;  %p2665_p0 = scmp.ge.s32.totalorder %s3142_s19, 2 }
 0x691   : > { %s4194_s17 = sld [smem:[#allocation29_spill]] }
 0x696   : > { %s2207_s26 = sand.u32 1, %s4193_s1  }
 0x697   : > { %p4195_p4 = scmp.ne.s32.totalorder %s4194_s17, 0  ;;  %s2208_s22 = scalar_lea.sflag [#allocation9], %s2207_s26 }
 0x699   : > { %p2652_p6 = pnand %p2665_p0, %p4195_p4 }
 0x69b   : > { %p2653_p5 = pneg %p2652_p6 }
 0x69d   : > { %3093 = dma.done.wait (%p2653_p5), %s2208_s22, 2048  }
 0x69e   : > { %3095 = vsyncadd (%p2653_p5), %s2208_s22, 4294965248  ;;  %s2217_s28 = scalar_lea.sflag [#allocation17], %s2207_s26 }
 0x69f   : > { %3097 = dma.done.wait (%p2653_p5), %s2217_s28, 2048  }
 0x6a0   : > { %3099 = vsyncadd (%p2653_p5), %s2217_s28, 4294965248  ;;  %s31_s19 = sadd.s32 1, %s3142_s19   ;;  %s4196_s15 = sld [smem:[#allocation26_spill]] }
 0x6a1   : > { %p28_p8 = scmp.ge.s32.totalorder %s31_s19, 8   ;;  %s4197_s16 = sld [smem:[#allocation27_spill]] }
 0x6a2   : > { %s4198_s30 = smov %s3106_s10  ;;  %s4199_s10 = smov %s3110_s11 }
 0x6a3   : > { %s4200_s11 = smov %s3362_s7  ;;  %s4201_s12 = smov %s3118_s13 }
 0x6a4   : > { %s4202_s13 = smov %s3122_s14  ;;  %s4203_s14 = smov %s3365_s18 }
 0x6a5   : > { %s4204_s17 = smov %s4207_s6  ;;  %s4205_s18 = smov %s4211_s25 }
 0x6a6   :  { %30 = sbr.rel (!%p28_p8) target bundleno = 23 (0x17), region = 148 }
 0x6ab   :  { %2222 = vsyncpa [#allocation8], 1 }
 0x6ac   :  { %2224 = vsyncpa [#allocation8 + $0x1], 1 }
 0x6ad   :  { %2225 = vsyncpa [#allocation11], 1 }
 0x6ae   :  { %2226 = vsyncpa [#allocation14], 1 }
 0x6af   :  { %2227 = vsyncpa [#allocation9], 1 }
 0x6b0   :  { %2229 = vsyncpa [#allocation9 + $0x1], 1 }
 0x6b1   :  { %2230 = vsyncpa [#allocation17], 1 }
 0x6b2   :  { %2232 = vsyncpa [#allocation17 + $0x1], 1 }

</bundles_post_ra>
